<compile_context>
chip_gen: v7x
topology: tpu7x:2x2x1
jax: 0.10.0
libtpu: 0.0.40
codegen_flags: <defaults>
</compile_context>

<pallas_src>
import functools

import jax
import jax.numpy as jnp
from jax.experimental import pallas as pl
from jax.experimental.pallas import tpu as pltpu


# ---------------------------------------------------------------------------
# Fused kernel: one (b, t) output frame per grid step.
#   xm/xc/xp : (H+2, W+2, Cin) zero-padded frames at times t-1, t, t+1
#   w_ref    : (27, Cin, Cout) conv taps, k = (dt*3 + dh)*3 + dw
#   b_ref    : (1, Cout)
#   ws_ref   : (Cin, Cout)   (only when the shortcut is learned)
#   o_ref    : (H*W, Cout)
# ---------------------------------------------------------------------------
def _block_kernel(xm_ref, xc_ref, xp_ref, w_ref, b_ref, *rest, H, W, learned):
    if learned:
        ws_ref, o_ref = rest
    else:
        (o_ref,) = rest
    Cin = xc_ref.shape[-1]

    xc = xc_ref[...]                                          # pre-activation frame t
    # Center (unpadded) frame == original x[b, :, t] — used by the shortcut.
    x_center = xc[1:1 + H, 1:1 + W, :].reshape(H * W, Cin)
    if learned:
        acc = jnp.dot(x_center, ws_ref[...],
                      preferred_element_type=jnp.float32)
    else:
        acc = x_center.astype(jnp.float32)
    acc = acc + b_ref[...].astype(jnp.float32)                # conv bias (added once)

    frames = (xm_ref[...], xc, xp_ref[...])
    for dt in range(3):
        a = frames[dt]
        a = jnp.where(a >= 0, a, 0.2 * a)                     # leaky_relu(., 0.2); zero padding stays zero
        for dh in range(3):
            for dw in range(3):
                patch = a[dh:dh + H, dw:dw + W, :].reshape(H * W, Cin)
                k = (dt * 3 + dh) * 3 + dw
                acc = acc + jnp.dot(patch, w_ref[k],
                                    preferred_element_type=jnp.float32)

    o_ref[...] = acc.astype(o_ref.dtype)


# ---------------------------------------------------------------------------
# Forward pass. x is NCDHW = (B, Cin, T, H, W), matching torch.nn.Conv3d.
# kparams must be in kernel-native layout (see prepare_params).
# ---------------------------------------------------------------------------
def video_resnet_block(x, kparams):
    w0 = kparams["conv0_w"]        # (27, Cin, Cout) — pre-transposed at init
    b0 = kparams["conv0_b"]        # (1, Cout)
    ws = kparams.get("conv_s_w")   # (Cin, Cout) or absent -> identity shortcut

    B, Cin, T, H, W = x.shape
    Cout = w0.shape[-1]
    if ws is None:
        assert Cin == Cout, "identity shortcut requires fin == fout"

    # Channels-last + zero padding (T, H, W each padded by 1).  leaky_relu(0)=0,
    # so activating the padded tensor inside the kernel preserves conv padding.
    x_cl = jnp.transpose(x, (0, 2, 3, 4, 1))                  # (B, T, H, W, Cin)
    xpad = jnp.pad(x_cl, ((0, 0), (1, 1), (1, 1), (1, 1), (0, 0)))
    Hp, Wp = H + 2, W + 2

    def frame_spec(off):
        return pl.BlockSpec((None, None, Hp, Wp, Cin),
                            lambda b, t, o=off: (b, t + o, 0, 0, 0))

    in_specs = [
        frame_spec(0), frame_spec(1), frame_spec(2),          # frames t-1, t, t+1
        pl.BlockSpec((27, Cin, Cout), lambda b, t: (0, 0, 0)),  # conv taps (fetched once)
        pl.BlockSpec((1, Cout), lambda b, t: (0, 0)),           # bias
    ]
    args = [xpad, xpad, xpad, w0, b0]
    if ws is not None:
        in_specs.append(pl.BlockSpec((Cin, Cout), lambda b, t: (0, 0)))
        args.append(ws)

    out = pl.pallas_call(
        functools.partial(_block_kernel, H=H, W=W, learned=ws is not None),
        out_shape=jax.ShapeDtypeStruct((B, T, H * W, Cout), jnp.float32),
        grid_spec=pltpu.PrefetchScalarGridSpec(
            num_scalar_prefetch=0,
            grid=(B, T),
            in_specs=in_specs,
            out_specs=pl.BlockSpec((None, None, H * W, Cout),
                                   lambda b, t: (b, t, 0, 0)),
        ),
        compiler_params=pltpu.CompilerParams(
            dimension_semantics=("parallel", "parallel")),
    )(*args)

    out = out.reshape(B, T, H, W, Cout)
    return jnp.transpose(out, (0, 4, 1, 2, 3))                # (B, Cout, T, H, W)


# ---------------------------------------------------------------------------
# Parameters: PyTorch layout at init, one-time conversion to kernel layout.
# ---------------------------------------------------------------------------
def init_torch_params(key, fin, fout):
    ks = jax.random.split(key, 3)
    p = {
        "conv0_w": 0.05 * jax.random.normal(ks[0], (fout, fin, 3, 3, 3), jnp.float32),
        "conv0_b": 0.05 * jax.random.normal(ks[1], (fout,), jnp.float32),
    }
    if fin != fout:   # learned shortcut, bias=False
        p["conv_s_w"] = 0.05 * jax.random.normal(ks[2], (fout, fin, 1, 1, 1), jnp.float32)
    return p


def prepare_params(tp):
    """One-time conversion to kernel-native, pre-transposed (K, N) layouts."""
    fout, fin = tp["conv0_w"].shape[:2]
    kp = {
        # (fout, fin, 3,3,3) -> (dt, dh, dw, fin, fout) -> (27, fin, fout)
        "conv0_w": jnp.transpose(tp["conv0_w"], (2, 3, 4, 1, 0)).reshape(27, fin, fout),
        "conv0_b": tp["conv0_b"].reshape(1, fout),
    }
    if "conv_s_w" in tp:
        kp["conv_s_w"] = jnp.transpose(tp["conv_s_w"][:, :, 0, 0, 0], (1, 0))  # (fin, fout)
    return kp


# ---------------------------------------------------------------------------
# Pure-JAX reference (PyTorch semantics: cross-correlation, padding 1).
# ---------------------------------------------------------------------------
def reference_forward(x, tp):
    a = jnp.where(x >= 0, x, 0.2 * x)                         # actvn = leaky_relu(., 0.2)
    dx = jax.lax.conv_general_dilated(
        a, tp["conv0_w"], window_strides=(1, 1, 1),
        padding=((1, 1), (1, 1), (1, 1)),
        dimension_numbers=("NCDHW", "OIDHW", "NCDHW"),
        precision=jax.lax.Precision.HIGHEST)
    dx = dx + tp["conv0_b"].reshape(1, -1, 1, 1, 1)
    if "conv_s_w" in tp:
        ws = tp["conv_s_w"][:, :, 0, 0, 0]                    # (fout, fin)
        x_s = jnp.einsum("bcthw,oc->bothw", x, ws,
                         precision=jax.lax.Precision.HIGHEST)
    else:
        x_s = x
    return x_s + dx


if __name__ == "__main__":
    B, T, H, W = 2, 4, 8, 8
    key = jax.random.PRNGKey(0)
    kx, k1, k2 = jax.random.split(key, 3)
    x = jax.random.normal(kx, (B, 64, T, H, W), dtype=jnp.float32)

    fwd = jax.jit(video_resnet_block)

    # Case 1: fin == fout -> identity shortcut.
    tp1 = init_torch_params(k1, 64, 64)
    out1 = fwd(x, prepare_params(tp1))
    jax.block_until_ready(out1)
    assert out1.shape == (B, 64, T, H, W)
    ref1 = reference_forward(x, tp1)
    assert float(jnp.max(jnp.abs(out1 - ref1))) < 2e-2

    # Case 2: fin != fout -> learned 1x1x1 shortcut (no bias).
    tp2 = init_torch_params(k2, 64, 128)
    out2 = fwd(x, prepare_params(tp2))
    jax.block_until_ready(out2)
    assert out2.shape == (B, 128, T, H, W)
    ref2 = reference_forward(x, tp2)
    assert float(jnp.max(jnp.abs(out2 - ref2))) < 2e-2

    print("KERNEL_OK")
</pallas_src>

<mosaic_0001>
module attributes {stable_mosaic.version = 11 : i64} {
  func.func @_block_kernel(%arg0: i32, %arg1: i32, %arg2: memref<1x1x10x10x64xf32, #tpu.memory_space<vmem>>, %arg3: memref<1x1x10x10x64xf32, #tpu.memory_space<vmem>>, %arg4: memref<1x1x10x10x64xf32, #tpu.memory_space<vmem>>, %arg5: memref<27x64x64xf32, #tpu.memory_space<vmem>>, %arg6: memref<1x64xf32, #tpu.memory_space<vmem>>, %arg7: memref<1x1x64x64xf32, #tpu.memory_space<vmem>>) attributes {dimension_semantics = [#tpu.dimension_semantics<parallel>, #tpu.dimension_semantics<parallel>], iteration_bounds = array<i64: 2, 4>, scalar_prefetch = 0 : i64, scratch_operands = 0 : i64, tpu.core_type = #tpu.core_type<tc>, window_params = [{transform_indices = @transform_0, window_bounds = array<i64: 1, 1, 10, 10, 64>}, {transform_indices = @transform_1, window_bounds = array<i64: 1, 1, 10, 10, 64>}, {transform_indices = @transform_2, window_bounds = array<i64: 1, 1, 10, 10, 64>}, {pipeline_mode = #tpu.pipeline_mode<synchronous>, transform_indices = @transform_3, window_bounds = array<i64: 27, 64, 64>}, {pipeline_mode = #tpu.pipeline_mode<synchronous>, transform_indices = @transform_4, window_bounds = array<i64: 1, 64>}, {transform_indices = @transform_5, window_bounds = array<i64: 1, 1, 64, 64>}]} {
    %c0 = arith.constant 0 : index
    %c0_0 = arith.constant 0 : index
    %c0_1 = arith.constant 0 : index
    %c0_2 = arith.constant 0 : index
    %c0_3 = arith.constant 0 : index
    %0 = vector.load %arg3[%c0, %c0_0, %c0_1, %c0_2, %c0_3] : memref<1x1x10x10x64xf32, #tpu.memory_space<vmem>>, vector<1x1x10x10x64xf32>
    %1 = vector.shape_cast %0 : vector<1x1x10x10x64xf32> to vector<10x10x64xf32>
    %2 = vector.extract_strided_slice %1 {offsets = [1, 1, 0], sizes = [8, 8, 64], strides = [1, 1, 1]} : vector<10x10x64xf32> to vector<8x8x64xf32>
    %3 = vector.shape_cast %2 : vector<8x8x64xf32> to vector<64x64xf32>
    %c0_4 = arith.constant 0 : index
    %c0_5 = arith.constant 0 : index
    %4 = vector.load %arg6[%c0_4, %c0_5] : memref<1x64xf32, #tpu.memory_space<vmem>>, vector<1x64xf32>
    %5 = vector.broadcast %4 : vector<1x64xf32> to vector<64x64xf32>
    %6 = arith.addf %3, %5 : vector<64x64xf32>
    %c0_6 = arith.constant 0 : index
    %c0_7 = arith.constant 0 : index
    %c0_8 = arith.constant 0 : index
    %c0_9 = arith.constant 0 : index
    %c0_10 = arith.constant 0 : index
    %7 = vector.load %arg2[%c0_6, %c0_7, %c0_8, %c0_9, %c0_10] : memref<1x1x10x10x64xf32, #tpu.memory_space<vmem>>, vector<1x1x10x10x64xf32>
    %8 = vector.shape_cast %7 : vector<1x1x10x10x64xf32> to vector<10x10x64xf32>
    %c0_11 = arith.constant 0 : index
    %c0_12 = arith.constant 0 : index
    %c0_13 = arith.constant 0 : index
    %c0_14 = arith.constant 0 : index
    %c0_15 = arith.constant 0 : index
    %9 = vector.load %arg4[%c0_11, %c0_12, %c0_13, %c0_14, %c0_15] : memref<1x1x10x10x64xf32, #tpu.memory_space<vmem>>, vector<1x1x10x10x64xf32>
    %10 = vector.shape_cast %9 : vector<1x1x10x10x64xf32> to vector<10x10x64xf32>
    %cst = arith.constant 0.000000e+00 : f32
    %11 = vector.broadcast %cst : f32 to vector<10x10x64xf32>
    %12 = arith.cmpf oge, %8, %11 : vector<10x10x64xf32>
    %cst_16 = arith.constant 2.000000e-01 : f32
    %13 = vector.broadcast %cst_16 : f32 to vector<10x10x64xf32>
    %14 = arith.mulf %13, %8 : vector<10x10x64xf32>
    %15 = arith.select %12, %8, %14 : vector<10x10x64xi1>, vector<10x10x64xf32>
    %16 = vector.extract_strided_slice %15 {offsets = [0, 0, 0], sizes = [8, 8, 64], strides = [1, 1, 1]} : vector<10x10x64xf32> to vector<8x8x64xf32>
    %17 = vector.shape_cast %16 : vector<8x8x64xf32> to vector<64x64xf32>
    %c0_17 = arith.constant 0 : index
    %c0_18 = arith.constant 0 : index
    %c0_19 = arith.constant 0 : index
    %18 = vector.load %arg5[%c0_17, %c0_18, %c0_19] : memref<27x64x64xf32, #tpu.memory_space<vmem>>, vector<1x64x64xf32>
    %19 = vector.shape_cast %18 : vector<1x64x64xf32> to vector<64x64xf32>
    %cst_20 = arith.constant dense<0.000000e+00> : vector<64x64xf32>
    %20 = tpu.matmul %17, %19, %cst_20 {dimension_numbers = #tpu.dot_dimension_numbers<[1], [0], [0], [1], [0, 0, 1, 1], [], []>} : vector<64x64xf32>, vector<64x64xf32>, vector<64x64xf32> -> vector<64x64xf32>
    %21 = arith.addf %6, %20 : vector<64x64xf32>
    %22 = vector.extract_strided_slice %15 {offsets = [0, 1, 0], sizes = [8, 8, 64], strides = [1, 1, 1]} : vector<10x10x64xf32> to vector<8x8x64xf32>
    %23 = vector.shape_cast %22 : vector<8x8x64xf32> to vector<64x64xf32>
    %c1 = arith.constant 1 : index
    %c0_21 = arith.constant 0 : index
    %c0_22 = arith.constant 0 : index
    %24 = vector.load %arg5[%c1, %c0_21, %c0_22] : memref<27x64x64xf32, #tpu.memory_space<vmem>>, vector<1x64x64xf32>
    %25 = vector.shape_cast %24 : vector<1x64x64xf32> to vector<64x64xf32>
    %cst_23 = arith.constant dense<0.000000e+00> : vector<64x64xf32>
    %26 = tpu.matmul %23, %25, %cst_23 {dimension_numbers = #tpu.dot_dimension_numbers<[1], [0], [0], [1], [0, 0, 1, 1], [], []>} : vector<64x64xf32>, vector<64x64xf32>, vector<64x64xf32> -> vector<64x64xf32>
    %27 = arith.addf %21, %26 : vector<64x64xf32>
    %28 = vector.extract_strided_slice %15 {offsets = [0, 2, 0], sizes = [8, 8, 64], strides = [1, 1, 1]} : vector<10x10x64xf32> to vector<8x8x64xf32>
    %29 = vector.shape_cast %28 : vector<8x8x64xf32> to vector<64x64xf32>
    %c2 = arith.constant 2 : index
    %c0_24 = arith.constant 0 : index
    %c0_25 = arith.constant 0 : index
    %30 = vector.load %arg5[%c2, %c0_24, %c0_25] : memref<27x64x64xf32, #tpu.memory_space<vmem>>, vector<1x64x64xf32>
    %31 = vector.shape_cast %30 : vector<1x64x64xf32> to vector<64x64xf32>
    %cst_26 = arith.constant dense<0.000000e+00> : vector<64x64xf32>
    %32 = tpu.matmul %29, %31, %cst_26 {dimension_numbers = #tpu.dot_dimension_numbers<[1], [0], [0], [1], [0, 0, 1, 1], [], []>} : vector<64x64xf32>, vector<64x64xf32>, vector<64x64xf32> -> vector<64x64xf32>
    %33 = arith.addf %27, %32 : vector<64x64xf32>
    %34 = vector.extract_strided_slice %15 {offsets = [1, 0, 0], sizes = [8, 8, 64], strides = [1, 1, 1]} : vector<10x10x64xf32> to vector<8x8x64xf32>
    %35 = vector.shape_cast %34 : vector<8x8x64xf32> to vector<64x64xf32>
    %c3 = arith.constant 3 : index
    %c0_27 = arith.constant 0 : index
    %c0_28 = arith.constant 0 : index
    %36 = vector.load %arg5[%c3, %c0_27, %c0_28] : memref<27x64x64xf32, #tpu.memory_space<vmem>>, vector<1x64x64xf32>
    %37 = vector.shape_cast %36 : vector<1x64x64xf32> to vector<64x64xf32>
    %cst_29 = arith.constant dense<0.000000e+00> : vector<64x64xf32>
    %38 = tpu.matmul %35, %37, %cst_29 {dimension_numbers = #tpu.dot_dimension_numbers<[1], [0], [0], [1], [0, 0, 1, 1], [], []>} : vector<64x64xf32>, vector<64x64xf32>, vector<64x64xf32> -> vector<64x64xf32>
    %39 = arith.addf %33, %38 : vector<64x64xf32>
    %40 = vector.extract_strided_slice %15 {offsets = [1, 1, 0], sizes = [8, 8, 64], strides = [1, 1, 1]} : vector<10x10x64xf32> to vector<8x8x64xf32>
    %41 = vector.shape_cast %40 : vector<8x8x64xf32> to vector<64x64xf32>
    %c4 = arith.constant 4 : index
    %c0_30 = arith.constant 0 : index
    %c0_31 = arith.constant 0 : index
    %42 = vector.load %arg5[%c4, %c0_30, %c0_31] : memref<27x64x64xf32, #tpu.memory_space<vmem>>, vector<1x64x64xf32>
    %43 = vector.shape_cast %42 : vector<1x64x64xf32> to vector<64x64xf32>
    %cst_32 = arith.constant dense<0.000000e+00> : vector<64x64xf32>
    %44 = tpu.matmul %41, %43, %cst_32 {dimension_numbers = #tpu.dot_dimension_numbers<[1], [0], [0], [1], [0, 0, 1, 1], [], []>} : vector<64x64xf32>, vector<64x64xf32>, vector<64x64xf32> -> vector<64x64xf32>
    %45 = arith.addf %39, %44 : vector<64x64xf32>
    %46 = vector.extract_strided_slice %15 {offsets = [1, 2, 0], sizes = [8, 8, 64], strides = [1, 1, 1]} : vector<10x10x64xf32> to vector<8x8x64xf32>
    %47 = vector.shape_cast %46 : vector<8x8x64xf32> to vector<64x64xf32>
    %c5 = arith.constant 5 : index
    %c0_33 = arith.constant 0 : index
    %c0_34 = arith.constant 0 : index
    %48 = vector.load %arg5[%c5, %c0_33, %c0_34] : memref<27x64x64xf32, #tpu.memory_space<vmem>>, vector<1x64x64xf32>
    %49 = vector.shape_cast %48 : vector<1x64x64xf32> to vector<64x64xf32>
    %cst_35 = arith.constant dense<0.000000e+00> : vector<64x64xf32>
    %50 = tpu.matmul %47, %49, %cst_35 {dimension_numbers = #tpu.dot_dimension_numbers<[1], [0], [0], [1], [0, 0, 1, 1], [], []>} : vector<64x64xf32>, vector<64x64xf32>, vector<64x64xf32> -> vector<64x64xf32>
    %51 = arith.addf %45, %50 : vector<64x64xf32>
    %52 = vector.extract_strided_slice %15 {offsets = [2, 0, 0], sizes = [8, 8, 64], strides = [1, 1, 1]} : vector<10x10x64xf32> to vector<8x8x64xf32>
    %53 = vector.shape_cast %52 : vector<8x8x64xf32> to vector<64x64xf32>
    %c6 = arith.constant 6 : index
    %c0_36 = arith.constant 0 : index
    %c0_37 = arith.constant 0 : index
    %54 = vector.load %arg5[%c6, %c0_36, %c0_37] : memref<27x64x64xf32, #tpu.memory_space<vmem>>, vector<1x64x64xf32>
    %55 = vector.shape_cast %54 : vector<1x64x64xf32> to vector<64x64xf32>
    %cst_38 = arith.constant dense<0.000000e+00> : vector<64x64xf32>
    %56 = tpu.matmul %53, %55, %cst_38 {dimension_numbers = #tpu.dot_dimension_numbers<[1], [0], [0], [1], [0, 0, 1, 1], [], []>} : vector<64x64xf32>, vector<64x64xf32>, vector<64x64xf32> -> vector<64x64xf32>
    %57 = arith.addf %51, %56 : vector<64x64xf32>
    %58 = vector.extract_strided_slice %15 {offsets = [2, 1, 0], sizes = [8, 8, 64], strides = [1, 1, 1]} : vector<10x10x64xf32> to vector<8x8x64xf32>
    %59 = vector.shape_cast %58 : vector<8x8x64xf32> to vector<64x64xf32>
    %c7 = arith.constant 7 : index
    %c0_39 = arith.constant 0 : index
    %c0_40 = arith.constant 0 : index
    %60 = vector.load %arg5[%c7, %c0_39, %c0_40] : memref<27x64x64xf32, #tpu.memory_space<vmem>>, vector<1x64x64xf32>
    %61 = vector.shape_cast %60 : vector<1x64x64xf32> to vector<64x64xf32>
    %cst_41 = arith.constant dense<0.000000e+00> : vector<64x64xf32>
    %62 = tpu.matmul %59, %61, %cst_41 {dimension_numbers = #tpu.dot_dimension_numbers<[1], [0], [0], [1], [0, 0, 1, 1], [], []>} : vector<64x64xf32>, vector<64x64xf32>, vector<64x64xf32> -> vector<64x64xf32>
    %63 = arith.addf %57, %62 : vector<64x64xf32>
    %64 = vector.extract_strided_slice %15 {offsets = [2, 2, 0], sizes = [8, 8, 64], strides = [1, 1, 1]} : vector<10x10x64xf32> to vector<8x8x64xf32>
    %65 = vector.shape_cast %64 : vector<8x8x64xf32> to vector<64x64xf32>
    %c8 = arith.constant 8 : index
    %c0_42 = arith.constant 0 : index
    %c0_43 = arith.constant 0 : index
    %66 = vector.load %arg5[%c8, %c0_42, %c0_43] : memref<27x64x64xf32, #tpu.memory_space<vmem>>, vector<1x64x64xf32>
    %67 = vector.shape_cast %66 : vector<1x64x64xf32> to vector<64x64xf32>
    %cst_44 = arith.constant dense<0.000000e+00> : vector<64x64xf32>
    %68 = tpu.matmul %65, %67, %cst_44 {dimension_numbers = #tpu.dot_dimension_numbers<[1], [0], [0], [1], [0, 0, 1, 1], [], []>} : vector<64x64xf32>, vector<64x64xf32>, vector<64x64xf32> -> vector<64x64xf32>
    %69 = arith.addf %63, %68 : vector<64x64xf32>
    %cst_45 = arith.constant 0.000000e+00 : f32
    %70 = vector.broadcast %cst_45 : f32 to vector<10x10x64xf32>
    %71 = arith.cmpf oge, %1, %70 : vector<10x10x64xf32>
    %cst_46 = arith.constant 2.000000e-01 : f32
    %72 = vector.broadcast %cst_46 : f32 to vector<10x10x64xf32>
    %73 = arith.mulf %72, %1 : vector<10x10x64xf32>
    %74 = arith.select %71, %1, %73 : vector<10x10x64xi1>, vector<10x10x64xf32>
    %75 = vector.extract_strided_slice %74 {offsets = [0, 0, 0], sizes = [8, 8, 64], strides = [1, 1, 1]} : vector<10x10x64xf32> to vector<8x8x64xf32>
    %76 = vector.shape_cast %75 : vector<8x8x64xf32> to vector<64x64xf32>
    %c9 = arith.constant 9 : index
    %c0_47 = arith.constant 0 : index
    %c0_48 = arith.constant 0 : index
    %77 = vector.load %arg5[%c9, %c0_47, %c0_48] : memref<27x64x64xf32, #tpu.memory_space<vmem>>, vector<1x64x64xf32>
    %78 = vector.shape_cast %77 : vector<1x64x64xf32> to vector<64x64xf32>
    %cst_49 = arith.constant dense<0.000000e+00> : vector<64x64xf32>
    %79 = tpu.matmul %76, %78, %cst_49 {dimension_numbers = #tpu.dot_dimension_numbers<[1], [0], [0], [1], [0, 0, 1, 1], [], []>} : vector<64x64xf32>, vector<64x64xf32>, vector<64x64xf32> -> vector<64x64xf32>
    %80 = arith.addf %69, %79 : vector<64x64xf32>
    %81 = vector.extract_strided_slice %74 {offsets = [0, 1, 0], sizes = [8, 8, 64], strides = [1, 1, 1]} : vector<10x10x64xf32> to vector<8x8x64xf32>
    %82 = vector.shape_cast %81 : vector<8x8x64xf32> to vector<64x64xf32>
    %c10 = arith.constant 10 : index
    %c0_50 = arith.constant 0 : index
    %c0_51 = arith.constant 0 : index
    %83 = vector.load %arg5[%c10, %c0_50, %c0_51] : memref<27x64x64xf32, #tpu.memory_space<vmem>>, vector<1x64x64xf32>
    %84 = vector.shape_cast %83 : vector<1x64x64xf32> to vector<64x64xf32>
    %cst_52 = arith.constant dense<0.000000e+00> : vector<64x64xf32>
    %85 = tpu.matmul %82, %84, %cst_52 {dimension_numbers = #tpu.dot_dimension_numbers<[1], [0], [0], [1], [0, 0, 1, 1], [], []>} : vector<64x64xf32>, vector<64x64xf32>, vector<64x64xf32> -> vector<64x64xf32>
    %86 = arith.addf %80, %85 : vector<64x64xf32>
    %87 = vector.extract_strided_slice %74 {offsets = [0, 2, 0], sizes = [8, 8, 64], strides = [1, 1, 1]} : vector<10x10x64xf32> to vector<8x8x64xf32>
    %88 = vector.shape_cast %87 : vector<8x8x64xf32> to vector<64x64xf32>
    %c11 = arith.constant 11 : index
    %c0_53 = arith.constant 0 : index
    %c0_54 = arith.constant 0 : index
    %89 = vector.load %arg5[%c11, %c0_53, %c0_54] : memref<27x64x64xf32, #tpu.memory_space<vmem>>, vector<1x64x64xf32>
    %90 = vector.shape_cast %89 : vector<1x64x64xf32> to vector<64x64xf32>
    %cst_55 = arith.constant dense<0.000000e+00> : vector<64x64xf32>
    %91 = tpu.matmul %88, %90, %cst_55 {dimension_numbers = #tpu.dot_dimension_numbers<[1], [0], [0], [1], [0, 0, 1, 1], [], []>} : vector<64x64xf32>, vector<64x64xf32>, vector<64x64xf32> -> vector<64x64xf32>
    %92 = arith.addf %86, %91 : vector<64x64xf32>
    %93 = vector.extract_strided_slice %74 {offsets = [1, 0, 0], sizes = [8, 8, 64], strides = [1, 1, 1]} : vector<10x10x64xf32> to vector<8x8x64xf32>
    %94 = vector.shape_cast %93 : vector<8x8x64xf32> to vector<64x64xf32>
    %c12 = arith.constant 12 : index
    %c0_56 = arith.constant 0 : index
    %c0_57 = arith.constant 0 : index
    %95 = vector.load %arg5[%c12, %c0_56, %c0_57] : memref<27x64x64xf32, #tpu.memory_space<vmem>>, vector<1x64x64xf32>
    %96 = vector.shape_cast %95 : vector<1x64x64xf32> to vector<64x64xf32>
    %cst_58 = arith.constant dense<0.000000e+00> : vector<64x64xf32>
    %97 = tpu.matmul %94, %96, %cst_58 {dimension_numbers = #tpu.dot_dimension_numbers<[1], [0], [0], [1], [0, 0, 1, 1], [], []>} : vector<64x64xf32>, vector<64x64xf32>, vector<64x64xf32> -> vector<64x64xf32>
    %98 = arith.addf %92, %97 : vector<64x64xf32>
    %99 = vector.extract_strided_slice %74 {offsets = [1, 1, 0], sizes = [8, 8, 64], strides = [1, 1, 1]} : vector<10x10x64xf32> to vector<8x8x64xf32>
    %100 = vector.shape_cast %99 : vector<8x8x64xf32> to vector<64x64xf32>
    %c13 = arith.constant 13 : index
    %c0_59 = arith.constant 0 : index
    %c0_60 = arith.constant 0 : index
    %101 = vector.load %arg5[%c13, %c0_59, %c0_60] : memref<27x64x64xf32, #tpu.memory_space<vmem>>, vector<1x64x64xf32>
    %102 = vector.shape_cast %101 : vector<1x64x64xf32> to vector<64x64xf32>
    %cst_61 = arith.constant dense<0.000000e+00> : vector<64x64xf32>
    %103 = tpu.matmul %100, %102, %cst_61 {dimension_numbers = #tpu.dot_dimension_numbers<[1], [0], [0], [1], [0, 0, 1, 1], [], []>} : vector<64x64xf32>, vector<64x64xf32>, vector<64x64xf32> -> vector<64x64xf32>
    %104 = arith.addf %98, %103 : vector<64x64xf32>
    %105 = vector.extract_strided_slice %74 {offsets = [1, 2, 0], sizes = [8, 8, 64], strides = [1, 1, 1]} : vector<10x10x64xf32> to vector<8x8x64xf32>
    %106 = vector.shape_cast %105 : vector<8x8x64xf32> to vector<64x64xf32>
    %c14 = arith.constant 14 : index
    %c0_62 = arith.constant 0 : index
    %c0_63 = arith.constant 0 : index
    %107 = vector.load %arg5[%c14, %c0_62, %c0_63] : memref<27x64x64xf32, #tpu.memory_space<vmem>>, vector<1x64x64xf32>
    %108 = vector.shape_cast %107 : vector<1x64x64xf32> to vector<64x64xf32>
    %cst_64 = arith.constant dense<0.000000e+00> : vector<64x64xf32>
    %109 = tpu.matmul %106, %108, %cst_64 {dimension_numbers = #tpu.dot_dimension_numbers<[1], [0], [0], [1], [0, 0, 1, 1], [], []>} : vector<64x64xf32>, vector<64x64xf32>, vector<64x64xf32> -> vector<64x64xf32>
    %110 = arith.addf %104, %109 : vector<64x64xf32>
    %111 = vector.extract_strided_slice %74 {offsets = [2, 0, 0], sizes = [8, 8, 64], strides = [1, 1, 1]} : vector<10x10x64xf32> to vector<8x8x64xf32>
    %112 = vector.shape_cast %111 : vector<8x8x64xf32> to vector<64x64xf32>
    %c15 = arith.constant 15 : index
    %c0_65 = arith.constant 0 : index
    %c0_66 = arith.constant 0 : index
    %113 = vector.load %arg5[%c15, %c0_65, %c0_66] : memref<27x64x64xf32, #tpu.memory_space<vmem>>, vector<1x64x64xf32>
    %114 = vector.shape_cast %113 : vector<1x64x64xf32> to vector<64x64xf32>
    %cst_67 = arith.constant dense<0.000000e+00> : vector<64x64xf32>
    %115 = tpu.matmul %112, %114, %cst_67 {dimension_numbers = #tpu.dot_dimension_numbers<[1], [0], [0], [1], [0, 0, 1, 1], [], []>} : vector<64x64xf32>, vector<64x64xf32>, vector<64x64xf32> -> vector<64x64xf32>
    %116 = arith.addf %110, %115 : vector<64x64xf32>
    %117 = vector.extract_strided_slice %74 {offsets = [2, 1, 0], sizes = [8, 8, 64], strides = [1, 1, 1]} : vector<10x10x64xf32> to vector<8x8x64xf32>
    %118 = vector.shape_cast %117 : vector<8x8x64xf32> to vector<64x64xf32>
    %c16 = arith.constant 16 : index
    %c0_68 = arith.constant 0 : index
    %c0_69 = arith.constant 0 : index
    %119 = vector.load %arg5[%c16, %c0_68, %c0_69] : memref<27x64x64xf32, #tpu.memory_space<vmem>>, vector<1x64x64xf32>
    %120 = vector.shape_cast %119 : vector<1x64x64xf32> to vector<64x64xf32>
    %cst_70 = arith.constant dense<0.000000e+00> : vector<64x64xf32>
    %121 = tpu.matmul %118, %120, %cst_70 {dimension_numbers = #tpu.dot_dimension_numbers<[1], [0], [0], [1], [0, 0, 1, 1], [], []>} : vector<64x64xf32>, vector<64x64xf32>, vector<64x64xf32> -> vector<64x64xf32>
    %122 = arith.addf %116, %121 : vector<64x64xf32>
    %123 = vector.extract_strided_slice %74 {offsets = [2, 2, 0], sizes = [8, 8, 64], strides = [1, 1, 1]} : vector<10x10x64xf32> to vector<8x8x64xf32>
    %124 = vector.shape_cast %123 : vector<8x8x64xf32> to vector<64x64xf32>
    %c17 = arith.constant 17 : index
    %c0_71 = arith.constant 0 : index
    %c0_72 = arith.constant 0 : index
    %125 = vector.load %arg5[%c17, %c0_71, %c0_72] : memref<27x64x64xf32, #tpu.memory_space<vmem>>, vector<1x64x64xf32>
    %126 = vector.shape_cast %125 : vector<1x64x64xf32> to vector<64x64xf32>
    %cst_73 = arith.constant dense<0.000000e+00> : vector<64x64xf32>
    %127 = tpu.matmul %124, %126, %cst_73 {dimension_numbers = #tpu.dot_dimension_numbers<[1], [0], [0], [1], [0, 0, 1, 1], [], []>} : vector<64x64xf32>, vector<64x64xf32>, vector<64x64xf32> -> vector<64x64xf32>
    %128 = arith.addf %122, %127 : vector<64x64xf32>
    %cst_74 = arith.constant 0.000000e+00 : f32
    %129 = vector.broadcast %cst_74 : f32 to vector<10x10x64xf32>
    %130 = arith.cmpf oge, %10, %129 : vector<10x10x64xf32>
    %cst_75 = arith.constant 2.000000e-01 : f32
    %131 = vector.broadcast %cst_75 : f32 to vector<10x10x64xf32>
    %132 = arith.mulf %131, %10 : vector<10x10x64xf32>
    %133 = arith.select %130, %10, %132 : vector<10x10x64xi1>, vector<10x10x64xf32>
    %134 = vector.extract_strided_slice %133 {offsets = [0, 0, 0], sizes = [8, 8, 64], strides = [1, 1, 1]} : vector<10x10x64xf32> to vector<8x8x64xf32>
    %135 = vector.shape_cast %134 : vector<8x8x64xf32> to vector<64x64xf32>
    %c18 = arith.constant 18 : index
    %c0_76 = arith.constant 0 : index
    %c0_77 = arith.constant 0 : index
    %136 = vector.load %arg5[%c18, %c0_76, %c0_77] : memref<27x64x64xf32, #tpu.memory_space<vmem>>, vector<1x64x64xf32>
    %137 = vector.shape_cast %136 : vector<1x64x64xf32> to vector<64x64xf32>
    %cst_78 = arith.constant dense<0.000000e+00> : vector<64x64xf32>
    %138 = tpu.matmul %135, %137, %cst_78 {dimension_numbers = #tpu.dot_dimension_numbers<[1], [0], [0], [1], [0, 0, 1, 1], [], []>} : vector<64x64xf32>, vector<64x64xf32>, vector<64x64xf32> -> vector<64x64xf32>
    %139 = arith.addf %128, %138 : vector<64x64xf32>
    %140 = vector.extract_strided_slice %133 {offsets = [0, 1, 0], sizes = [8, 8, 64], strides = [1, 1, 1]} : vector<10x10x64xf32> to vector<8x8x64xf32>
    %141 = vector.shape_cast %140 : vector<8x8x64xf32> to vector<64x64xf32>
    %c19 = arith.constant 19 : index
    %c0_79 = arith.constant 0 : index
    %c0_80 = arith.constant 0 : index
    %142 = vector.load %arg5[%c19, %c0_79, %c0_80] : memref<27x64x64xf32, #tpu.memory_space<vmem>>, vector<1x64x64xf32>
    %143 = vector.shape_cast %142 : vector<1x64x64xf32> to vector<64x64xf32>
    %cst_81 = arith.constant dense<0.000000e+00> : vector<64x64xf32>
    %144 = tpu.matmul %141, %143, %cst_81 {dimension_numbers = #tpu.dot_dimension_numbers<[1], [0], [0], [1], [0, 0, 1, 1], [], []>} : vector<64x64xf32>, vector<64x64xf32>, vector<64x64xf32> -> vector<64x64xf32>
    %145 = arith.addf %139, %144 : vector<64x64xf32>
    %146 = vector.extract_strided_slice %133 {offsets = [0, 2, 0], sizes = [8, 8, 64], strides = [1, 1, 1]} : vector<10x10x64xf32> to vector<8x8x64xf32>
    %147 = vector.shape_cast %146 : vector<8x8x64xf32> to vector<64x64xf32>
    %c20 = arith.constant 20 : index
    %c0_82 = arith.constant 0 : index
    %c0_83 = arith.constant 0 : index
    %148 = vector.load %arg5[%c20, %c0_82, %c0_83] : memref<27x64x64xf32, #tpu.memory_space<vmem>>, vector<1x64x64xf32>
    %149 = vector.shape_cast %148 : vector<1x64x64xf32> to vector<64x64xf32>
    %cst_84 = arith.constant dense<0.000000e+00> : vector<64x64xf32>
    %150 = tpu.matmul %147, %149, %cst_84 {dimension_numbers = #tpu.dot_dimension_numbers<[1], [0], [0], [1], [0, 0, 1, 1], [], []>} : vector<64x64xf32>, vector<64x64xf32>, vector<64x64xf32> -> vector<64x64xf32>
    %151 = arith.addf %145, %150 : vector<64x64xf32>
    %152 = vector.extract_strided_slice %133 {offsets = [1, 0, 0], sizes = [8, 8, 64], strides = [1, 1, 1]} : vector<10x10x64xf32> to vector<8x8x64xf32>
    %153 = vector.shape_cast %152 : vector<8x8x64xf32> to vector<64x64xf32>
    %c21 = arith.constant 21 : index
    %c0_85 = arith.constant 0 : index
    %c0_86 = arith.constant 0 : index
    %154 = vector.load %arg5[%c21, %c0_85, %c0_86] : memref<27x64x64xf32, #tpu.memory_space<vmem>>, vector<1x64x64xf32>
    %155 = vector.shape_cast %154 : vector<1x64x64xf32> to vector<64x64xf32>
    %cst_87 = arith.constant dense<0.000000e+00> : vector<64x64xf32>
    %156 = tpu.matmul %153, %155, %cst_87 {dimension_numbers = #tpu.dot_dimension_numbers<[1], [0], [0], [1], [0, 0, 1, 1], [], []>} : vector<64x64xf32>, vector<64x64xf32>, vector<64x64xf32> -> vector<64x64xf32>
    %157 = arith.addf %151, %156 : vector<64x64xf32>
    %158 = vector.extract_strided_slice %133 {offsets = [1, 1, 0], sizes = [8, 8, 64], strides = [1, 1, 1]} : vector<10x10x64xf32> to vector<8x8x64xf32>
    %159 = vector.shape_cast %158 : vector<8x8x64xf32> to vector<64x64xf32>
    %c22 = arith.constant 22 : index
    %c0_88 = arith.constant 0 : index
    %c0_89 = arith.constant 0 : index
    %160 = vector.load %arg5[%c22, %c0_88, %c0_89] : memref<27x64x64xf32, #tpu.memory_space<vmem>>, vector<1x64x64xf32>
    %161 = vector.shape_cast %160 : vector<1x64x64xf32> to vector<64x64xf32>
    %cst_90 = arith.constant dense<0.000000e+00> : vector<64x64xf32>
    %162 = tpu.matmul %159, %161, %cst_90 {dimension_numbers = #tpu.dot_dimension_numbers<[1], [0], [0], [1], [0, 0, 1, 1], [], []>} : vector<64x64xf32>, vector<64x64xf32>, vector<64x64xf32> -> vector<64x64xf32>
    %163 = arith.addf %157, %162 : vector<64x64xf32>
    %164 = vector.extract_strided_slice %133 {offsets = [1, 2, 0], sizes = [8, 8, 64], strides = [1, 1, 1]} : vector<10x10x64xf32> to vector<8x8x64xf32>
    %165 = vector.shape_cast %164 : vector<8x8x64xf32> to vector<64x64xf32>
    %c23 = arith.constant 23 : index
    %c0_91 = arith.constant 0 : index
    %c0_92 = arith.constant 0 : index
    %166 = vector.load %arg5[%c23, %c0_91, %c0_92] : memref<27x64x64xf32, #tpu.memory_space<vmem>>, vector<1x64x64xf32>
    %167 = vector.shape_cast %166 : vector<1x64x64xf32> to vector<64x64xf32>
    %cst_93 = arith.constant dense<0.000000e+00> : vector<64x64xf32>
    %168 = tpu.matmul %165, %167, %cst_93 {dimension_numbers = #tpu.dot_dimension_numbers<[1], [0], [0], [1], [0, 0, 1, 1], [], []>} : vector<64x64xf32>, vector<64x64xf32>, vector<64x64xf32> -> vector<64x64xf32>
    %169 = arith.addf %163, %168 : vector<64x64xf32>
    %170 = vector.extract_strided_slice %133 {offsets = [2, 0, 0], sizes = [8, 8, 64], strides = [1, 1, 1]} : vector<10x10x64xf32> to vector<8x8x64xf32>
    %171 = vector.shape_cast %170 : vector<8x8x64xf32> to vector<64x64xf32>
    %c24 = arith.constant 24 : index
    %c0_94 = arith.constant 0 : index
    %c0_95 = arith.constant 0 : index
    %172 = vector.load %arg5[%c24, %c0_94, %c0_95] : memref<27x64x64xf32, #tpu.memory_space<vmem>>, vector<1x64x64xf32>
    %173 = vector.shape_cast %172 : vector<1x64x64xf32> to vector<64x64xf32>
    %cst_96 = arith.constant dense<0.000000e+00> : vector<64x64xf32>
    %174 = tpu.matmul %171, %173, %cst_96 {dimension_numbers = #tpu.dot_dimension_numbers<[1], [0], [0], [1], [0, 0, 1, 1], [], []>} : vector<64x64xf32>, vector<64x64xf32>, vector<64x64xf32> -> vector<64x64xf32>
    %175 = arith.addf %169, %174 : vector<64x64xf32>
    %176 = vector.extract_strided_slice %133 {offsets = [2, 1, 0], sizes = [8, 8, 64], strides = [1, 1, 1]} : vector<10x10x64xf32> to vector<8x8x64xf32>
    %177 = vector.shape_cast %176 : vector<8x8x64xf32> to vector<64x64xf32>
    %c25 = arith.constant 25 : index
    %c0_97 = arith.constant 0 : index
    %c0_98 = arith.constant 0 : index
    %178 = vector.load %arg5[%c25, %c0_97, %c0_98] : memref<27x64x64xf32, #tpu.memory_space<vmem>>, vector<1x64x64xf32>
    %179 = vector.shape_cast %178 : vector<1x64x64xf32> to vector<64x64xf32>
    %cst_99 = arith.constant dense<0.000000e+00> : vector<64x64xf32>
    %180 = tpu.matmul %177, %179, %cst_99 {dimension_numbers = #tpu.dot_dimension_numbers<[1], [0], [0], [1], [0, 0, 1, 1], [], []>} : vector<64x64xf32>, vector<64x64xf32>, vector<64x64xf32> -> vector<64x64xf32>
    %181 = arith.addf %175, %180 : vector<64x64xf32>
    %182 = vector.extract_strided_slice %133 {offsets = [2, 2, 0], sizes = [8, 8, 64], strides = [1, 1, 1]} : vector<10x10x64xf32> to vector<8x8x64xf32>
    %183 = vector.shape_cast %182 : vector<8x8x64xf32> to vector<64x64xf32>
    %c26 = arith.constant 26 : index
    %c0_100 = arith.constant 0 : index
    %c0_101 = arith.constant 0 : index
    %184 = vector.load %arg5[%c26, %c0_100, %c0_101] : memref<27x64x64xf32, #tpu.memory_space<vmem>>, vector<1x64x64xf32>
    %185 = vector.shape_cast %184 : vector<1x64x64xf32> to vector<64x64xf32>
    %cst_102 = arith.constant dense<0.000000e+00> : vector<64x64xf32>
    %186 = tpu.matmul %183, %185, %cst_102 {dimension_numbers = #tpu.dot_dimension_numbers<[1], [0], [0], [1], [0, 0, 1, 1], [], []>} : vector<64x64xf32>, vector<64x64xf32>, vector<64x64xf32> -> vector<64x64xf32>
    %187 = arith.addf %181, %186 : vector<64x64xf32>
    %c0_103 = arith.constant 0 : index
    %c0_104 = arith.constant 0 : index
    %c0_105 = arith.constant 0 : index
    %c0_106 = arith.constant 0 : index
    %188 = vector.load %arg7[%c0_103, %c0_104, %c0_105, %c0_106] : memref<1x1x64x64xf32, #tpu.memory_space<vmem>>, vector<1x1x64x64xf32>
    %189 = vector.shape_cast %188 : vector<1x1x64x64xf32> to vector<64x64xf32>
    %190 = vector.shape_cast %187 : vector<64x64xf32> to vector<1x1x64x64xf32>
    tpu.vector_store %arg7[%c0_103, %c0_104, %c0_105, %c0_106], %190 {strides = array<i32>} : memref<1x1x64x64xf32, #tpu.memory_space<vmem>>, vector<1x1x64x64xf32>,
    return
  }
  func.func @transform_0(%arg0: i32, %arg1: i32) -> (i32, i32, i32, i32, i32) {
    %c0_i32 = arith.constant 0 : i32
    %0 = arith.addi %arg1, %c0_i32 : i32
    %c0_i32_0 = arith.constant 0 : i32
    %c0_i32_1 = arith.constant 0 : i32
    %c0_i32_2 = arith.constant 0 : i32
    %c0_i32_3 = arith.constant 0 : i32
    return %arg0, %0, %c0_i32_0, %c0_i32_1, %c0_i32_2 : i32, i32, i32, i32, i32
  }
  func.func @transform_1(%arg0: i32, %arg1: i32) -> (i32, i32, i32, i32, i32) {
    %c1_i32 = arith.constant 1 : i32
    %0 = arith.addi %arg1, %c1_i32 : i32
    %c0_i32 = arith.constant 0 : i32
    %c0_i32_0 = arith.constant 0 : i32
    %c0_i32_1 = arith.constant 0 : i32
    %c0_i32_2 = arith.constant 0 : i32
    return %arg0, %0, %c0_i32, %c0_i32_0, %c0_i32_1 : i32, i32, i32, i32, i32
  }
  func.func @transform_2(%arg0: i32, %arg1: i32) -> (i32, i32, i32, i32, i32) {
    %c2_i32 = arith.constant 2 : i32
    %0 = arith.addi %arg1, %c2_i32 : i32
    %c0_i32 = arith.constant 0 : i32
    %c0_i32_0 = arith.constant 0 : i32
    %c0_i32_1 = arith.constant 0 : i32
    %c0_i32_2 = arith.constant 0 : i32
    return %arg0, %0, %c0_i32, %c0_i32_0, %c0_i32_1 : i32, i32, i32, i32, i32
  }
  func.func @transform_3(%arg0: i32, %arg1: i32) -> (i32, i32, i32) {
    %c0_i32 = arith.constant 0 : i32
    %c0_i32_0 = arith.constant 0 : i32
    %c0_i32_1 = arith.constant 0 : i32
    %c0_i32_2 = arith.constant 0 : i32
    return %c0_i32, %c0_i32_0, %c0_i32_1 : i32, i32, i32
  }
  func.func @transform_4(%arg0: i32, %arg1: i32) -> (i32, i32) {
    %c0_i32 = arith.constant 0 : i32
    %c0_i32_0 = arith.constant 0 : i32
    %c0_i32_1 = arith.constant 0 : i32
    return %c0_i32, %c0_i32_0 : i32, i32
  }
  func.func @transform_5(%arg0: i32, %arg1: i32) -> (i32, i32, i32, i32) {
    %c0_i32 = arith.constant 0 : i32
    %c0_i32_0 = arith.constant 0 : i32
    %c0_i32_1 = arith.constant 0 : i32
    return %arg0, %arg1, %c0_i32, %c0_i32_0 : i32, i32, i32, i32
  }
}

</mosaic_0001>

<bundles_post_ra>
// kernel: video_resnet_block.1
= control target key start
LH: loop header
LB: loop body
LE: loop exit
PB: predicated region body
PF: predicated region fallthrough
CT: control target
= control target key end

     0   :  { %10 = vsyncpa [#allocation3], 0  ;;  %s8848_s0 = inlined_call_operand.vmem [shape: f32[2,6,10,10,64], index: 0, kind: input, shape index: {}, may-alias: {0,1,2}]   ;;  %s8849_s1 = inlined_call_operand.vmem [shape: f32[2,6,10,10,64], index: 1, kind: input, shape index: {}, may-alias: {0,1,2}]   ;;  %s8850_s2 = inlined_call_operand.vmem [shape: f32[2,6,10,10,64], index: 2, kind: input, shape index: {}, may-alias: {0,1,2}]   ;;  %s8851_s3 = inlined_call_operand.vmem [shape: f32[27,64,64], index: 3, kind: input, shape index: {}]   ;;  %s8852_s4 = inlined_call_operand.vmem [shape: f32[1,64], index: 4, kind: input, shape index: {}]   ;;  %s8853_s5 = inlined_call_operand.hbm [shape: f32[2,4,64,64], index: 5, kind: output, shape index: {}]  }
   0x1   :  { %12 = vsyncpa [#allocation3 + $0x1], 0  ;;  %s7009_s18 = smov 0   ;;  %s7011_s19 = smov 0  }
   0x2   :  { %s7013_s20 = smov 0   ;;  %s7015_s21 = smov 0  }
   0x3   :  { %s7017_s22 = smov 0   ;;  %s7019_s23 = smov 0  }
   0x4   :  { %s7021_s24 = smov 0   ;;  %s7023_s25 = smov 0  }
   0x5 LB: > { %8877 = sst [smem:[#allocation5_spill]] %s6966_s23  ;;  %s4503_s26 = sadd.s32 4294967295, %s6974_s25   ;;  %s6974_s25 = sphi %s7023_s25, %s18_s25   ;;  %s6970_s24 = sphi %s7021_s24, %s8927_s24   ;;  %s6966_s23 = sphi %s7019_s23, %s8926_s23   ;;  %s6962_s22 = sphi %s7017_s22, %s8925_s22   ;;  %s6958_s21 = sphi %s7015_s21, %s8924_s21   ;;  %s6954_s20 = sphi %s7013_s20, %s8930_s20   ;;  %s6950_s19 = sphi %s7011_s19, %s8929_s19   ;;  %s6946_s18 = sphi %s7009_s18, %s8928_s18  }
   0x6   : > { %8878 = sst [smem:[#allocation6_spill]] %s6970_s24  ;;  %s4504_s27 = sadd.s32 4294967294, %s6974_s25  }
   0x7   : > { %s27_s28 = sadd.s32 1, %s6966_s23  ;;  %s30_s29 = sadd.s32 1, %s6970_s24 }
   0x8   : > { %p28_p0 = scmp.ge.s32.totalorder %s27_s28, 4  ;;  %p179_p1 = scmp.ne.s32.totalorder %s6954_s20, %s6950_s19 }
   0x9   : > { %p180_p2 = scmp.eq.s32.totalorder %s4503_s26, 7  ;;  %p185_p5 = scmp.ne.s32.totalorder %s6950_s19, %s6946_s18 }
   0xa   : > { %s8932_s28 = smov (%p28_p0, %s27_s28), 0  ;;  %s8934_s29 = smov (!%p28_p0, %s30_s29), %s6970_s24 }
   0xb   : > { %8879 = sst [smem:[#allocation7_spill]] %s8932_s28  ;;  %s165_s30 = ssub.s32 %s6966_s23, %s8932_s28 }
   0xc   : > { %p7060_p3 = por %p180_p2, %p179_p1  ;;  %p32_p4 = scmp.ge.s32.totalorder %s8934_s29, 2 }
   0xd   : > { %p186_p6 = scmp.eq.s32.totalorder %s4504_s27, 7  ;;  %p4507_p7 = scmp.ge.s32.totalorder %s6974_s25, 1 }
   0xe   : > { %s8936_s29 = smov (%p32_p4, %s8934_s29), 0  ;;  %p250_p9 = scmp.lt.s32.totalorder %s6974_s25, 9 }
   0xf   : > { %8881 = sst [smem:[#allocation8_spill]] %s8936_s29  ;;  %p7069_p8 = por %p186_p6, %p185_p5 }
  0x10   : > { %s164_s8 = ssub.s32 %s6970_s24, %s8936_s29  ;;  %s169_s9 = sadd.s32 1, %s6954_s20 }
  0x11   : > { %s166_s10 = sor.u32 %s165_s30, %s164_s8  ;;  %p251_p10 = pnand %p4507_p7, %p250_p9 }
  0x12   : > { %p167_p11 = scmp.eq.s32.totalorder %s166_s10, 0 }
  0x13   : > { %254 = sbr.rel (%p251_p10) target bundleno = 500 (0x1f4), region = 40 }
  0x14   : > { %s7078_s11 = scalar_select %p167_p11, %s6954_s20, %s169_s9  }
  0x1a   : > { %v517_v0 = vld [vmem:[%s8851_s3] sm:$0xff]  ;;  %v518_v1 = vld [vmem:[%s8851_s3 + $0x8] sm:$0xff]  ;;  %p302_p12 = scmp.lt.s32.totalorder %s6962_s22, 1  ;;  %p304_p13 = scmp.lt.s32.totalorder %s6958_s21, 5  ;;  %v519_v5 = vld [vmem:[%s8851_s3 + $0x10] sm:$0xff]  ;;  %vm525_vm0 = vcmask 523264  }
  0x1b   : > { %v4713_v2 = vld [vmem:[%s8851_s3 + $0x340] sm:$0xff]  ;;  %v6131_v3 = vpack.c.bf16 %v518_v1, %v517_v0  ;;  %v4714_v4 = vld [vmem:[%s8851_s3 + $0x348] sm:$0xff]  ;;  %v520_v6 = vld [vmem:[%s8851_s3 + $0x18] sm:$0xff]  ;;  %s311_s12 = sadd.s32 1, %s6958_s21  ;;  %vm369_vm1 = vcmask 1046528   ;;  %s4939_s28 = sshll.u32 %s6962_s22, 5 }
  0x1c   : > { %v6339_v7 = vpack.c.bf16 %v4714_v4, %v4713_v2  ;;  %v6135_v8 = vpack.c.bf16 %v520_v6, %v519_v5  ;;  %v4715_v9 = vld [vmem:[%s8851_s3 + $0x350] sm:$0xff]  ;;  %v4716_v10 = vld [vmem:[%s8851_s3 + $0x358] sm:$0xff]  ;;  %v521_v11 = vld [vmem:[%s8851_s3 + $0x20] sm:$0xff]  ;;  %s303_s27 = scalar_select %p302_p12, %s6962_s22, 1 }
  0x1d   : > { %6132 = vmatprep.subr.bf16.mxu1 %v6131_v3  ;;  %v6343_v12 = vpack.c.bf16 %v4716_v10, %v4715_v9  ;;  %v522_v13 = vld [vmem:[%s8851_s3 + $0x28] sm:$0xff]  ;;  %v4717_v14 = vld [vmem:[%s8851_s3 + $0x360] sm:$0xff]  ;;  %s305_s15 = scalar_select %p304_p13, %s6958_s21, 5  ;;  %v523_v16 = vld [vmem:[%s8851_s3 + $0x30] sm:$0xff] }
  0x1e   : > { %v4718_v15 = vld [vmem:[%s8851_s3 + $0x368] sm:$0xff]  ;;  %6340 = vmatprep.subr.bf16.mxu0 %v6339_v7  ;;  %6134 = vmatpush3.bf16.msra.mxu1 %v6131_v3  ;;  %v524_v17 = vld [vmem:[%s8851_s3 + $0x38] sm:$0xff]  ;;  %s7129_s30 = smul.u32 120, %s303_s27  ;;  %p314_p0 = scmp.lt.s32.totalorder %s311_s12, 5  ;;  %v6139_v18 = vpack.c.bf16 %v522_v13, %v521_v11  ;;  %v4719_v19 = vld [vmem:[%s8851_s3 + $0x370] sm:$0xff] }
  0x1f   : > { %6342 = vmatpush3.bf16.msra.mxu0 %v6339_v7  ;;  %6136 = vmatprep.subr.bf16.mxu1 %v6135_v8  ;;  %v4720_v20 = vld [vmem:[%s8851_s3 + $0x378] sm:$0xff]  ;;  %s6787_s14 = smul.u32 20, %s305_s15  ;;  %v4521_v21 = vld [vmem:[%s8851_s3 + $0x40] sm:$0xff]  ;;  %v4522_v22 = vld [vmem:[%s8851_s3 + $0x48] sm:$0xff]  ;;  %v6347_v23 = vpack.c.bf16 %v4718_v15, %v4717_v14  ;;  %v6143_v33 = vpack.c.bf16 %v524_v17, %v523_v16  ;;  %s322_s27 = sadd.s32 2, %s6958_s21 }
  0x20   : > { %6344 = vmatprep.subr.bf16.mxu0 %v6343_v12  ;;  %s8938_s12 = smov (!%p314_p0, %s311_s12), 5  ;;  %v4729_v24 = vld [vmem:[%s8851_s3 + $0x380] sm:$0xff]  ;;  %v4730_v25 = vld [vmem:[%s8851_s3 + $0x388] sm:$0xff]  ;;  %v4523_v26 = vld [vmem:[%s8851_s3 + $0x50] sm:$0xff]  ;;  %v6351_v37 = vpack.c.bf16 %v4720_v20, %v4719_v19  ;;  %v7188_v40 = vpack.c.bf16 %v4522_v22, %v4521_v21  ;;  %p7757_p1 = scmp.lt.s32.totalorder %s322_s27, 5 }
  0x21   : > { %s308_s13 = sadd.s32 %s7129_s30, %s6787_s14  ;;  %v4524_v27 = vld [vmem:[%s8851_s3 + $0x58] sm:$0xff]  ;;  %v4731_v28 = vld [vmem:[%s8851_s3 + $0x390] sm:$0xff]  ;;  %s6789_s8 = smul.u32 20, %s8938_s12  ;;  %v4525_v30 = vld [vmem:[%s8851_s3 + $0x60] sm:$0xff]  ;;  %v7190_v41 = vpack.c.bf16 %v4730_v25, %v4729_v24 }
  0x22   : > { %v4732_v29 = vld [vmem:[%s8851_s3 + $0x398] sm:$0xff]  ;;  %6138 = vmatpush3.bf16.msra.mxu1 %v6135_v8  ;;  %s4509_s26 = sshll.u32 %s308_s13, 3  ;;  %v4526_v31 = vld [vmem:[%s8851_s3 + $0x68] sm:$0xff]  ;;  %v4733_v32 = vld [vmem:[%s8851_s3 + $0x3a0] sm:$0xff]  ;;  %v7193_v43 = vpack.c.bf16 %v4524_v27, %v4523_v26  ;;  %s8940_s27 = smov (!%p7757_p1, %s322_s27), 5 }
  0x23   : > { %6346 = vmatpush3.bf16.msra.mxu0 %v6343_v12  ;;  %6140 = vmatprep.subr.bf16.mxu1 %v6139_v18  ;;  %s7174_s12 = scalar_lea.vmem %s8848_s0, %s4509_s26  ;;  %v4734_v34 = vld [vmem:[%s8851_s3 + $0x3a8] sm:$0xff]  ;;  %v4527_v35 = vld [vmem:[%s8851_s3 + $0x70] sm:$0xff]  ;;  %v4528_v36 = vld [vmem:[%s8851_s3 + $0x78] sm:$0xff]  ;;  %s318_s26 = sadd.s32 %s6789_s8, %s7129_s30  ;;  %v7195_v45 = vpack.c.bf16 %v4732_v29, %v4731_v28  ;;  %v7208_v50 = vpack.c.bf16 %v4526_v31, %v4525_v30 }
  0x24   : > { %6348 = vmatprep.subr.bf16.mxu0 %v6347_v23  ;;  %v417_v38 = vld [vmem:[%s7174_s12] sm:$0xff]  ;;  %v419_v39 = vld [vmem:[%s7174_s12 + $0x10] sm:$0xff]  ;;  %s4510_s14 = sshll.u32 %s318_s26, 3  ;;  %v7210_v51 = vpack.c.bf16 %v4734_v34, %v4733_v32  ;;  %v7218_v56 = vpack.c.bf16 %v4528_v36, %v4527_v35  ;;  %s6790_s23 = smul.u32 20, %s8940_s27 }
  0x25   : > { %v421_v42 = vld [vmem:[%s7174_s12 + $0x20] sm:$0xff]  ;;  %vm457_vm2 = vcmp.ge.f32.partialorder %v417_v38, 0.0  ;;  %v477_v44 = vmul.f32 0.2, %v417_v38  ;;  %vm459_vm3 = vcmp.ge.f32.partialorder %v419_v39, 0.0  ;;  %s7200_s8 = scalar_lea.vmem %s8849_s1, %s4510_s14  ;;  %v7203_v48 = vld [vmem:[%s7174_s12 + $0x30] sm:$0xff] }
  0x26   : > { %6142 = vmatpush3.bf16.msra.mxu1 %v6139_v18  ;;  %v479_v46 = vmul.f32 0.2, %v419_v39  ;;  %v481_v47 = vmul.f32 0.2, %v421_v42  ;;  %v7206_v49 = vld [vmem:[%s7174_s12 + $0x40] sm:$0xff]  ;;  %v335_v53 = vld [vmem:[%s7200_s8 + $0x10] sm:$0xff]  ;;  %s329_s15 = sadd.s32 %s6790_s23, %s7129_s30 }
  0x27   : > { %6350 = vmatpush3.bf16.msra.mxu0 %v6347_v23  ;;  %6144 = vmatprep.subr.bf16.mxu1 %v6143_v33  ;;  %v7212_v52 = vsel %vm457_vm2, %v417_v38, %v477_v44  ;;  %v336_v54 = vld [vmem:[%s7200_s8 + $0x18] sm:$0x3]  ;;  %v337_v55 = vld [vmem:[%s7200_s8 + $0x20] sm:$0xff]  ;;  %vm461_vm4 = vcmp.ge.f32.partialorder %v421_v42, 0.0  ;;  %vm463_vm5 = vcmp.ge.f32.partialorder %v7203_v48, 0.0  ;;  %vm1758_vm6 = vcmp.ge.f32.partialorder %v335_v53, 0.0 }
  0x28   : > { %6352 = vmatprep.subr.bf16.mxu0 %v6351_v37  ;;  %5391 = vmatprep.mubr.msk.f32.mxu1 %vm525_vm0, %v7212_v52  ;;  %v671_v57 = vrot.slane %v7212_v52, 1  ;;  %vm1759_vm7 = vcmp.ge.f32.partialorder %v336_v54, 0.0  ;;  %v338_v58 = vld [vmem:[%s7200_s8 + $0x28] sm:$0x3]  ;;  %vm465_vm8 = vcmp.ge.f32.partialorder %v7206_v49, 0.0  ;;  %v7226_v61 = vsel %vm459_vm3, %v419_v39, %v479_v46  ;;  %v339_v1 = vld [vmem:[%s7200_s8 + $0x30] sm:$0xff] }
  0x29   : > { %v1778_v59 = vmul.f32 0.2, %v335_v53  ;;  %v1779_v60 = vmul.f32 0.2, %v336_v54  ;;  %vm1760_vm9 = vcmp.ge.f32.partialorder %v337_v55, 0.0  ;;  %v674_v63 = vrot.slane %v7226_v61, 1 }
  0x2a   : > { %6146 = vmatpush3.bf16.msra.mxu1 %v6143_v33  ;;  %vm1761_vm10 = vcmp.ge.f32.partialorder %v338_v58, 0.0  ;;  %v1780_v0 = vmul.f32 0.2, %v337_v55  ;;  %v1781_v4 = vmul.f32 0.2, %v338_v58  ;;  %v7237_v5 = vsel %vm461_vm4, %v421_v42, %v481_v47  ;;  %v341_v11 = vld [vmem:[%s7200_s8 + $0x40] sm:$0xff] }
  0x2b   : > { %6354 = vmatpush3.bf16.msra.mxu0 %v6351_v37  ;;  %v7231_v2 = vsel %vm1758_vm6, %v335_v53, %v1778_v59  ;;  %v7233_v3 = vsel %vm1759_vm7, %v336_v54, %v1779_v60  ;;  %6148 = vmatprep.subr.bf16.mxu1 %v7188_v40  ;;  %v340_v6 = vld [vmem:[%s7200_s8 + $0x38] sm:$0x3]  ;;  %v342_v12 = vld [vmem:[%s7200_s8 + $0x48] sm:$0x3]  ;;  %vm1762_vm11 = vcmp.ge.f32.partialorder %v339_v1, 0.0  ;;  %v343_v19 = vld [vmem:[%s7200_s8 + $0x50] sm:$0xff] }
  0x2c   : > { %v1973_v7 = vrot.slane %v7231_v2, 1  ;;  %v1974_v8 = vrot.slane %v7233_v3, 1  ;;  %v2136_v9 = vrot.slane %v7233_v3, 2  ;;  %v7244_v10 = vsel %vm1760_vm9, %v337_v55, %v1780_v0  ;;  %6356 = vmatprep.subr.bf16.mxu0 %v7190_v41  ;;  %v344_v26 = vld [vmem:[%s7200_s8 + $0x58] sm:$0x3]  ;;  %v427_v31 = vld [vmem:[%s7174_s12 + $0x50] sm:$0xff] }
  0x2d   : > { %5392 = vmatmul.mubr.msk.f32.vlgmr.msra.gmra.mrb[0].mxu1 %vm525_vm0, %v7226_v61  ;;  %v7252_v13 = vsel %vm1761_vm10, %v338_v58, %v1781_v4  ;;  %v1976_v14 = vrot.slane %v7244_v10, 1  ;;  %vm1763_vm12 = vcmp.ge.f32.partialorder %v340_v6, 0.0  ;;  %v1782_v18 = vmul.f32 0.2, %v339_v1  ;;  %v345_v35 = vld [vmem:[%s7200_s8 + $0x60] sm:$0xff]  ;;  %v347_v47 = vld [vmem:[%s7200_s8 + $0x70] sm:$0xff] }
  0x2e   : > { %v7256_v15 = vsel %vm369_vm1, %v1973_v7, %v1974_v8  ;;  %v1977_v16 = vrot.slane %v7252_v13, 1  ;;  %v2139_v17 = vrot.slane %v7252_v13, 2  ;;  %6150 = vmatpush3.bf16.msra.mxu1 %v7188_v40  ;;  %5394 = vmatprep.mubr.msk.f32.mxu1 %vm525_vm0, %v7237_v5  ;;  %v1783_v20 = vmul.f32 0.2, %v340_v6  ;;  %v346_v36 = vld [vmem:[%s7200_s8 + $0x68] sm:$0x3] }
  0x2f   : > { %8883 = vst [vmem:[#allocation9_spill] sm:$0xff] %v7256_v15  ;;  %5755 = vmatprep.mubr.msk.f32.mxu0 %vm525_vm0, %v7256_v15  ;;  %v483_v21 = vmul.f32 0.2, %v7203_v48  ;;  %6152 = vmatprep.subr.bf16.mxu1 %v7193_v43  ;;  %vm1764_vm13 = vcmp.ge.f32.partialorder %v341_v11, 0.0  ;;  %vm1765_vm14 = vcmp.ge.f32.partialorder %v342_v12, 0.0  ;;  %v7272_v23 = vsel %vm1762_vm11, %v339_v1, %v1782_v18  ;;  %v429_v44 = vld [vmem:[%s7174_s12 + $0x60] sm:$0xff] }
  0x30   : > { %v7269_v22 = vsel %vm369_vm1, %v1976_v14, %v1977_v16  ;;  %v1784_v24 = vmul.f32 0.2, %v341_v11  ;;  %v1785_v25 = vmul.f32 0.2, %v342_v12  ;;  %v7278_v27 = vsel %vm1763_vm12, %v340_v6, %v1783_v20  ;;  %v348_v55 = vld [vmem:[%s7200_s8 + $0x78] sm:$0x3] }
  0x31   : > { %8884 = vst [vmem:[#allocation10_spill] sm:$0xff] %v7269_v22  ;;  %5756 = vmatmul.mubr.msk.f32.vlgmr.msra.gmra.mrb[0].mxu0 %vm525_vm0, %v7269_v22  ;;  %v1979_v28 = vrot.slane %v7272_v23, 1  ;;  %v7284_v29 = vsel %vm463_vm5, %v7203_v48, %v483_v21  ;;  %v485_v30 = vmul.f32 0.2, %v7206_v49  ;;  %v1980_v32 = vrot.slane %v7278_v27, 1  ;;  %v431_v0 = vld [vmem:[%s7174_s12 + $0x70] sm:$0xff] }
  0x32   : > { %6358 = vmatpush3.bf16.msra.mxu0 %v7190_v41  ;;  %5395 = vmatmul.mubr.msk.f32.gmra.mrb[2].mxu1 %vm525_vm0, %v7284_v29  ;;  %v7293_v33 = vsel %vm1764_vm13, %v341_v11, %v1784_v24  ;;  %v7296_v34 = vsel %vm1765_vm14, %v342_v12, %v1785_v25  ;;  %vm1766_vm15 = vcmp.ge.f32.partialorder %v343_v19, 0.0  ;;  %vm1767_vm2 = vcmp.ge.f32.partialorder %v344_v26, 0.0  ;;  %v349_v6 = vld [vmem:[%s7200_s8 + $0x80] sm:$0xff]  ;;  %v350_v7 = vld [vmem:[%s7200_s8 + $0x88] sm:$0x3]  ;;  %v4735_v12 = vld [vmem:[%s8851_s3 + $0x3b0] sm:$0xff] }
  0x33   : > { %v1982_v37 = vrot.slane %v7293_v33, 1  ;;  %v1983_v38 = vrot.slane %v7296_v34, 1  ;;  %6360 = vmatprep.subr.bf16.mxu0 %v7195_v45  ;;  %6154 = vmatpush3.bf16.msra.mxu1 %v7193_v43  ;;  %v7307_v39 = vsel %vm465_vm8, %v7206_v49, %v485_v30  ;;  %v7310_v40 = vsel %vm369_vm1, %v1979_v28, %v1980_v32  ;;  %v418_v24 = vld [vmem:[%s7174_s12 + $0x8] sm:$0x3]  ;;  %s4511_s30 = sshll.u32 %s329_s15, 3  ;;  %s299_s23 = sand.u32 1, %s6950_s19  }
  0x34   : > { %8885 = vst [vmem:[#allocation11_spill] sm:$0xff] %v7310_v40  ;;  %5397 = vmatprep.mubr.msk.f32.mxu1 %vm525_vm0, %v7307_v39  ;;  %v1786_v41 = vmul.f32 0.2, %v343_v19  ;;  %v1787_v42 = vmul.f32 0.2, %v344_v26  ;;  %vm467_vm3 = vcmp.ge.f32.partialorder %v427_v31, 0.0  ;;  %6156 = vmatprep.subr.bf16.mxu1 %v7208_v50  ;;  %s7870_s24 = scalar_lea.vmem %s8850_s2, %s4511_s30 }
  0x35   : > { %5758 = vmatprep.mubr.msk.f32.mxu0 %vm525_vm0, %v7310_v40  ;;  %v7319_v43 = vsel %vm369_vm1, %v1982_v37, %v1983_v38  ;;  %v487_v46 = vmul.f32 0.2, %v427_v31  ;;  %vm1768_vm4 = vcmp.ge.f32.partialorder %v345_v35, 0.0  ;;  %vm1769_vm5 = vcmp.ge.f32.partialorder %v346_v36, 0.0  ;;  %v4537_v37 = vld [vmem:[%s8851_s3 + $0x80] sm:$0xff]  ;;  %v4538_v38 = vld [vmem:[%s8851_s3 + $0x88] sm:$0xff] }
  0x36   : > { %8886 = vst [vmem:[#allocation12_spill] sm:$0xff] %v7319_v43  ;;  %5759 = vmatmul.mubr.msk.f32.gmra.mrb[2].mxu0 %vm525_vm0, %v7319_v43  ;;  %v7325_v48 = vsel %vm1766_vm15, %v343_v19, %v1786_v41  ;;  %v7328_v49 = vsel %vm1767_vm2, %v344_v26, %v1787_v42  ;;  %v1788_v53 = vmul.f32 0.2, %v345_v35  ;;  %v1789_v54 = vmul.f32 0.2, %v346_v36  ;;  %v4736_v19 = vld [vmem:[%s8851_s3 + $0x3b8] sm:$0xff] }
  0x37   : > { %vm833_vm6 = vcmask 1045504   ;;  %6362 = vmatpush3.bf16.msra.mxu0 %v7195_v45  ;;  %v1985_v58 = vrot.slane %v7325_v48, 1  ;;  %v1986_v59 = vrot.slane %v7328_v49, 1  ;;  %v7335_v60 = vsel %vm467_vm3, %v427_v31, %v487_v46  ;;  %6158 = vmatpush3.bf16.msra.mxu1 %v7208_v50  ;;  %s4508_s29 = sshll.u32 %s299_s23, 6  ;;  %s6976_s15 = smov [#allocation2]  }
  0x38   : > { %vm469_vm7 = vcmp.ge.f32.partialorder %v429_v44, 0.0  ;;  %5398 = vmatmul.mubr.msk.f32.gmra.mrb[4].mxu1 %vm525_vm0, %v7335_v60  ;;  %v7342_v1 = vsel %vm1768_vm4, %v345_v35, %v1788_v53  ;;  %v7345_v4 = vsel %vm1769_vm5, %v346_v36, %v1789_v54  ;;  %6364 = vmatprep.subr.bf16.mxu0 %v7210_v51  ;;  %v489_v45 = vmul.f32 0.2, %v429_v44  ;;  %v420_v36 = vld [vmem:[%s7174_s12 + $0x18] sm:$0x3]  ;;  %s6884_s16 = sshll.u32 %s6976_s15, 4  ;;  %s6885_s16 = int_to_ptr.vmem [resolvable:$false] %s6884_s16 }
  0x39   : > { %vm1770_vm8 = vcmp.ge.f32.partialorder %v347_v47, 0.0  ;;  %v7351_v8 = vsel %vm369_vm1, %v1985_v58, %v1986_v59  ;;  %v1988_v50 = vrot.slane %v7342_v1, 1  ;;  %v1989_v11 = vrot.slane %v7345_v4, 1  ;;  %6160 = vmatprep.subr.bf16.mxu1 %v7218_v56  ;;  %v422_v58 = vld [vmem:[%s7174_s12 + $0x28] sm:$0x3]  ;;  %s6886_s17 = scalar_lea.vmem %s6885_s16, 2048 }
  0x3a   : > { %8887 = vst [vmem:[#allocation13_spill] sm:$0xff] %v7351_v8  ;;  %vm1771_vm9 = vcmp.ge.f32.partialorder %v348_v55, 0.0  ;;  %5761 = vmatprep.mubr.msk.f32.mxu0 %vm525_vm0, %v7351_v8  ;;  %v7362_v14 = vsel %vm469_vm7, %v429_v44, %v489_v45  ;;  %v1790_v16 = vmul.f32 0.2, %v347_v47  ;;  %v1791_v18 = vmul.f32 0.2, %v348_v55 }
  0x3b   : > { %vm471_vm10 = vcmp.ge.f32.partialorder %v431_v0, 0.0  ;;  %v7368_v20 = vsel %vm369_vm1, %v1988_v50, %v1989_v11  ;;  %6366 = vmatpush3.bf16.msra.mxu0 %v7210_v51  ;;  %5400 = vmatprep.mubr.msk.f32.mxu1 %vm525_vm0, %v7362_v14  ;;  %v491_v21 = vmul.f32 0.2, %v431_v0  ;;  %vm1772_vm11 = vcmp.ge.f32.partialorder %v349_v6, 0.0  ;;  %v4745_v44 = vld [vmem:[%s8851_s3 + $0x3c0] sm:$0xff] }
  0x3c   : > { %8888 = vst [vmem:[#allocation14_spill] sm:$0xff] %v7368_v20  ;;  %vm1773_vm12 = vcmp.ge.f32.partialorder %v350_v7, 0.0  ;;  %5762 = vmatmul.mubr.msk.f32.gmra.mrb[4].mxu0 %vm525_vm0, %v7368_v20  ;;  %v7377_v25 = vsel %vm1770_vm8, %v347_v47, %v1790_v16  ;;  %v7380_v26 = vsel %vm1771_vm9, %v348_v55, %v1791_v18  ;;  %v1792_v28 = vmul.f32 0.2, %v349_v6  ;;  %6162 = vmatpush3.bf16.msra.mxu1 %v7218_v56  ;;  %v4746_v55 = vld [vmem:[%s8851_s3 + $0x3c8] sm:$0xff] }
  0x3d   : > { %8889 = vst [vmem:[#allocation15_spill] sm:$0xff] %v7377_v25  ;;  %v1793_v30 = vmul.f32 0.2, %v350_v7  ;;  %v1991_v51 = vrot.slane %v7377_v25, 1  ;;  %v1992_v31 = vrot.slane %v7380_v26, 1  ;;  %v7386_v32 = vsel %vm471_vm10, %v431_v0, %v491_v21 }
  0x3e   : > { %v6367_v35 = vpack.c.bf16 %v4736_v19, %v4735_v12  ;;  %5401 = vmatmul.mubr.msk.f32.gmra.mrb[6].mxu1 %vm525_vm0, %v7386_v32  ;;  %v7398_v56 = vsel %vm1772_vm11, %v349_v6, %v1792_v28  ;;  %vm458_vm13 = vcmp.ge.f32.partialorder %v418_v24, 0.0  ;;  %v478_v42 = vmul.f32 0.2, %v418_v24  ;;  %v424_v12 = vld [vmem:[%s7174_s12 + $0x38] sm:$0x3]  ;;  %v4539_v28 = vld [vmem:[%s8851_s3 + $0x90] sm:$0xff] }
  0x3f   : > { %8890 = vst [vmem:[#allocation16_spill] sm:$0xff] %v7398_v56  ;;  %v7401_v41 = vsel %vm1773_vm12, %v350_v7, %v1793_v30  ;;  %v7407_v46 = vsel %vm369_vm1, %v1991_v51, %v1992_v31  ;;  %v2420_v47 = vrot.slane %v7398_v56, 1  ;;  %v2135_v54 = vrot.slane %v7231_v2, 2  ;;  %v4747_v30 = vld [vmem:[%s8851_s3 + $0x3d0] sm:$0xff]  ;;  %v4748_v31 = vld [vmem:[%s8851_s3 + $0x3d8] sm:$0xff] }
  0x40   : > { %8891 = vst [vmem:[#allocation17_spill] sm:$0xff] %v7407_v46  ;;  %v2421_v53 = vrot.slane %v7401_v41, 1  ;;  %6368 = vmatprep.subr.bf16.mxu0 %v6367_v35  ;;  %5764 = vmatprep.mubr.msk.f32.mxu0 %vm525_vm0, %v7407_v46  ;;  %v7418_v59 = vsel %vm458_vm13, %v418_v24, %v478_v42  ;;  %vm460_vm14 = vcmp.ge.f32.partialorder %v420_v36, 0.0  ;;  %v480_v0 = vmul.f32 0.2, %v420_v36 }
  0x41   : > { %6370 = vmatpush3.bf16.msra.mxu0 %v6367_v35  ;;  %v6163_v45 = vpack.c.bf16 %v4538_v38, %v4537_v37  ;;  %v672_v7 = vrot.slane %v7418_v59, 1  ;;  %v7427_v50 = vsel %vm833_vm6, %v2135_v54, %v2136_v9  ;;  %v2138_v11 = vrot.slane %v7244_v10, 2  ;;  %v426_v35 = vld [vmem:[%s7174_s12 + $0x48] sm:$0x3] }
  0x42   : > { %v7421_v6 = vsel %vm369_vm1, %v2420_v47, %v2421_v53  ;;  %8892 = vst [vmem:[#allocation18_spill] sm:$0xff] %v7427_v50  ;;  %v7433_v16 = vsel %vm460_vm14, %v420_v36, %v480_v0  ;;  %v6371_v18 = vpack.c.bf16 %v4746_v55, %v4745_v44  ;;  %vm462_vm15 = vcmp.ge.f32.partialorder %v422_v58, 0.0  ;;  %v428_v53 = vld [vmem:[%s7174_s12 + $0x58] sm:$0x3]  ;;  %v4541_v0 = vld [vmem:[%s8851_s3 + $0xa0] sm:$0xff] }
  0x43   : > { %5765 = vmatmul.mubr.msk.f32.gmra.mrb[6].mxu0 %vm525_vm0, %v7421_v6  ;;  %6164 = vmatprep.subr.bf16.mxu1 %v6163_v45  ;;  %v482_v19 = vmul.f32 0.2, %v422_v58  ;;  %v673_v3 = vsel %vm369_vm1, %v671_v57, %v672_v7  ;;  %v675_v9 = vrot.slane %v7433_v16, 1  ;;  %v7444_v21 = vsel %vm833_vm6, %v2138_v11, %v2139_v17  ;;  %v4540_v57 = vld [vmem:[%s8851_s3 + $0x98] sm:$0xff] }
  0x44   : > { %5783 = vmatprep.mubr.msk.f32.mxu0 %vm525_vm0, %v7427_v50  ;;  %8893 = vst [vmem:[#allocation19_spill] sm:$0xff] %v7444_v21  ;;  %v677_v24 = vrot.slane %v7237_v5, 1  ;;  %5419 = vmatprep.mubr.msk.f32.mxu1 %vm525_vm0, %v673_v3  ;;  %v2141_v17 = vrot.slane %v7272_v23, 2  ;;  %v2142_v51 = vrot.slane %v7278_v27, 2  ;;  %vm464_vm2 = vcmp.ge.f32.partialorder %v424_v12, 0.0 }
  0x45   : > { %6372 = vmatprep.subr.bf16.mxu0 %v6371_v18  ;;  %v7457_v13 = vsel %vm462_vm15, %v422_v58, %v482_v19  ;;  %v7468_v36 = vsel %vm369_vm1, %v674_v63, %v675_v9  ;;  %v484_v38 = vmul.f32 0.2, %v424_v12  ;;  %v680_v42 = vrot.slane %v7284_v29, 1  ;;  %v430_v19 = vld [vmem:[%s7174_s12 + $0x68] sm:$0x3] }
  0x46   : > { %v678_v37 = vrot.slane %v7457_v13, 1  ;;  %5420 = vmatmul.mubr.msk.f32.vlgmr.msra.gmra.mrb[0].mxu1 %vm525_vm0, %v7468_v36  ;;  %v7477_v27 = vsel %vm833_vm6, %v2141_v17, %v2142_v51  ;;  %v6167_v44 = vpack.c.bf16 %v4540_v57, %v4539_v28  ;;  %v2144_v47 = vrot.slane %v7293_v33, 2  ;;  %v4750_v28 = vld [vmem:[%s8851_s3 + $0x3e8] sm:$0xff] }
  0x47   : > { %5784 = vmatmul.mubr.msk.f32.vlgmr.msra.gmra.mrb[0].mxu0 %vm525_vm0, %v7444_v21  ;;  %8894 = vst [vmem:[#allocation20_spill] sm:$0xff] %v7477_v27  ;;  %v2145_v63 = vrot.slane %v7296_v34, 2  ;;  %6166 = vmatpush3.bf16.msra.mxu1 %v6163_v45  ;;  %v7486_v55 = vsel %vm464_vm2, %v424_v12, %v484_v38  ;;  %v6375_v58 = vpack.c.bf16 %v4748_v31, %v4747_v30  ;;  %vm466_vm3 = vcmp.ge.f32.partialorder %v426_v35, 0.0  ;;  %v4542_v34 = vld [vmem:[%s8851_s3 + $0xa8] sm:$0xff]  ;;  %v4749_v45 = vld [vmem:[%s8851_s3 + $0x3e0] sm:$0xff] }
  0x48   : > { %6374 = vmatpush3.bf16.msra.mxu0 %v6371_v18  ;;  %v7483_v54 = vsel %vm369_vm1, %v677_v24, %v678_v37  ;;  %5786 = vmatprep.mubr.msk.f32.mxu0 %vm525_vm0, %v7477_v27  ;;  %v681_v7 = vrot.slane %v7486_v55, 1  ;;  %v486_v12 = vmul.f32 0.2, %v426_v35  ;;  %v683_v18 = vrot.slane %v7307_v39, 1 }
  0x49   : > { %5422 = vmatprep.mubr.msk.f32.mxu1 %vm525_vm0, %v7483_v54  ;;  %v7503_v11 = vsel %vm833_vm6, %v2144_v47, %v2145_v63  ;;  %6168 = vmatprep.subr.bf16.mxu1 %v6167_v44  ;;  %v2147_v3 = vrot.slane %v7325_v48, 2  ;;  %v2148_v9 = vrot.slane %v7328_v49, 2  ;;  %vm468_vm4 = vcmp.ge.f32.partialorder %v428_v53, 0.0 }
  0x4a   : > { %8895 = vst [vmem:[#allocation21_spill] sm:$0xff] %v7503_v11  ;;  %6376 = vmatprep.subr.bf16.mxu0 %v6375_v58  ;;  %v488_v24 = vmul.f32 0.2, %v428_v53  ;;  %v7513_v57 = vsel %vm369_vm1, %v680_v42, %v681_v7  ;;  %v7518_v30 = vsel %vm466_vm3, %v426_v35, %v486_v12  ;;  %v686_v17 = vrot.slane %v7335_v60, 1  ;;  %v432_v42 = vld [vmem:[%s7174_s12 + $0x78] sm:$0x3] }
  0x4b   : > { %5787 = vmatmul.mubr.msk.f32.gmra.mrb[2].mxu0 %vm525_vm0, %v7503_v11  ;;  %v6171_v51 = vpack.c.bf16 %v4542_v34, %v4541_v0  ;;  %5423 = vmatmul.mubr.msk.f32.gmra.mrb[2].mxu1 %vm525_vm0, %v7513_v57  ;;  %v684_v49 = vrot.slane %v7518_v30, 1  ;;  %v7525_v31 = vsel %vm833_vm6, %v2147_v3, %v2148_v9  ;;  %v2150_v38 = vrot.slane %v7342_v1, 2  ;;  %v4752_v3 = vld [vmem:[%s8851_s3 + $0x3f8] sm:$0xff] }
  0x4c   : > { %6378 = vmatpush3.bf16.msra.mxu0 %v6375_v58  ;;  %8896 = vst [vmem:[#allocation22_spill] sm:$0xff] %v7525_v31  ;;  %v7527_v37 = vsel %vm468_vm4, %v428_v53, %v488_v24  ;;  %6170 = vmatpush3.bf16.msra.mxu1 %v6167_v44  ;;  %v2151_v47 = vrot.slane %v7345_v4, 2  ;;  %v6379_v63 = vpack.c.bf16 %v4750_v28, %v4749_v45  ;;  %vm470_vm5 = vcmp.ge.f32.partialorder %v430_v19, 0.0  ;;  %v4543_v58 = vld [vmem:[%s8851_s3 + $0xb0] sm:$0xff]  ;;  %v4544_v53 = vld [vmem:[%s8851_s3 + $0xb8] sm:$0xff] }
  0x4d   : > { %5789 = vmatprep.mubr.msk.f32.mxu0 %vm525_vm0, %v7525_v31  ;;  %v687_v35 = vrot.slane %v7527_v37, 1  ;;  %v7542_v0 = vsel %vm369_vm1, %v683_v18, %v684_v49  ;;  %6172 = vmatprep.subr.bf16.mxu1 %v6171_v51  ;;  %v490_v44 = vmul.f32 0.2, %v430_v19  ;;  %v689_v34 = vrot.slane %v7362_v14, 1  ;;  %v4751_v18 = vld [vmem:[%s8851_s3 + $0x3f0] sm:$0xff] }
  0x4e   : > { %v2153_v7 = vrot.slane %v7377_v25, 2  ;;  %5425 = vmatprep.mubr.msk.f32.mxu1 %vm525_vm0, %v7542_v0  ;;  %v7552_v45 = vsel %vm833_vm6, %v2150_v38, %v2151_v47  ;;  %6380 = vmatprep.subr.bf16.mxu0 %v6379_v63  ;;  %v2154_v12 = vrot.slane %v7380_v26, 2  ;;  %vm472_vm7 = vcmp.ge.f32.partialorder %v432_v42, 0.0  ;;  %v4554_v47 = vld [vmem:[%s8851_s3 + $0xc8] sm:$0xff] }
  0x4f   : > { %v7549_v4 = vsel %vm369_vm1, %v686_v17, %v687_v35  ;;  %8897 = vst [vmem:[#allocation23_spill] sm:$0xff] %v7552_v45  ;;  %5790 = vmatmul.mubr.msk.f32.gmra.mrb[4].mxu0 %vm525_vm0, %v7552_v45  ;;  %v7566_v9 = vsel %vm470_vm5, %v430_v19, %v490_v44  ;;  %v492_v24 = vmul.f32 0.2, %v432_v42  ;;  %v692_v26 = vrot.slane %v7386_v32, 1  ;;  %v4553_v17 = vld [vmem:[%s8851_s3 + $0xc0] sm:$0xff] }
  0x50   : > { %5426 = vmatmul.mubr.msk.f32.gmra.mrb[4].mxu1 %vm525_vm0, %v7549_v4  ;;  %v6175_v28 = vpack.c.bf16 %v4544_v53, %v4543_v58  ;;  %6382 = vmatpush3.bf16.msra.mxu0 %v6379_v63  ;;  %v690_v49 = vrot.slane %v7566_v9, 1  ;;  %v7574_v38 = vsel %vm833_vm6, %v2153_v7, %v2154_v12  ;;  %v2547_v35 = vrot.slane %v7398_v56, 2  ;;  %v4761_v58 = vld [vmem:[%s8851_s3 + $0x400] sm:$0xff] }
  0x51   : > { %6174 = vmatpush3.bf16.msra.mxu1 %v6171_v51  ;;  %8898 = vst [vmem:[#allocation24_spill] sm:$0xff] %v7574_v38  ;;  %v2548_v19 = vrot.slane %v7401_v41, 2  ;;  %v4762_v51 = vld [vmem:[%s8851_s3 + $0x408] sm:$0xff]  ;;  %v837_v63 = vrot.slane %v7226_v61, 2  ;;  %5792 = vmatprep.mubr.msk.f32.mxu0 %vm525_vm0, %v7574_v38  ;;  %v7591_v53 = vsel %vm472_vm7, %v432_v42, %v492_v24  ;;  %v6383_v41 = vpack.c.bf16 %v4752_v3, %v4751_v18 }
  0x52   : > { %6176 = vmatprep.subr.bf16.mxu1 %v6175_v28  ;;  %v835_v44 = vrot.slane %v7418_v59, 2  ;;  %v7595_v7 = vsel %vm369_vm1, %v689_v34, %v690_v49  ;;  %v693_v12 = vrot.slane %v7591_v53, 1  ;;  %v838_v50 = vrot.slane %v7433_v16, 2  ;;  %v4555_v49 = vld [vmem:[%s8851_s3 + $0xd0] sm:$0xff] }
  0x53   : > { %v7599_v62 = vsel %vm833_vm6, %v2547_v35, %v2548_v19  ;;  %5428 = vmatprep.mubr.msk.f32.mxu1 %vm525_vm0, %v7595_v7  ;;  %v8899_v42 = vrot.slane %v7212_v52, 2  ;;  %v6179_v18 = vpack.c.bf16 %v4554_v47, %v4553_v17  ;;  %v6387_v34 = vpack.c.bf16 %v4762_v51, %v4761_v58  ;;  %6384 = vmatprep.subr.bf16.mxu0 %v6383_v41  ;;  %v4556_v52 = vld [vmem:[%s8851_s3 + $0xd8] sm:$0xff] }
  0x54   : > { %5793 = vmatmul.mubr.msk.f32.gmra.mrb[6].mxu0 %vm525_vm0, %v7599_v62  ;;  %v840_v3 = vrot.slane %v7237_v5, 2  ;;  %v7611_v24 = vsel %vm369_vm1, %v692_v26, %v693_v12  ;;  %v841_v16 = vrot.slane %v7457_v13, 2  ;;  %v4763_v26 = vld [vmem:[%s8851_s3 + $0x410] sm:$0xff]  ;;  %v4764_v13 = vld [vmem:[%s8851_s3 + $0x418] sm:$0xff]  ;;  %v843_v17 = vrot.slane %v7284_v29, 2 }
  0x55   : > { %v836_v59 = vsel %vm833_vm6, %v8899_v42, %v835_v44  ;;  %6178 = vmatpush3.bf16.msra.mxu1 %v6175_v28  ;;  %6386 = vmatpush3.bf16.msra.mxu0 %v6383_v41  ;;  %v7632_v28 = vsel %vm833_vm6, %v837_v63, %v838_v50  ;;  %v844_v35 = vrot.slane %v7486_v55, 2  ;;  %v6183_v47 = vpack.c.bf16 %v4556_v52, %v4555_v49  ;;  %v4557_v63 = vld [vmem:[%s8851_s3 + $0xe0] sm:$0xff]  ;;  %v4558_v55 = vld [vmem:[%s8851_s3 + $0xe8] sm:$0xff]  ;;  %v4560_v52 = vld [vmem:[%s8851_s3 + $0xf8] sm:$0xff] }
  0x56   : > { %5429 = vmatmul.mubr.msk.f32.gmra.mrb[6].mxu1 %vm525_vm0, %v7611_v24  ;;  %5811 = vmatprep.mubr.msk.f32.mxu0 %vm525_vm0, %v7244_v10  ;;  %v7637_v19 = vsel %vm833_vm6, %v840_v3, %v841_v16  ;;  %v846_v58 = vrot.slane %v7307_v39, 2  ;;  %v847_v51 = vrot.slane %v7518_v30, 2  ;;  %v6391_v50 = vpack.c.bf16 %v4764_v13, %v4763_v26  ;;  %v4765_v30 = vld [vmem:[%s8851_s3 + $0x420] sm:$0xff]  ;;  %v4766_v41 = vld [vmem:[%s8851_s3 + $0x428] sm:$0xff]  ;;  %v4768_v13 = vld [vmem:[%s8851_s3 + $0x438] sm:$0xff] }
  0x57   : > { %5447 = vmatprep.mubr.msk.f32.mxu1 %vm525_vm0, %v836_v59  ;;  %6180 = vmatprep.subr.bf16.mxu1 %v6179_v18  ;;  %v7660_v44 = vsel %vm833_vm6, %v843_v17, %v844_v35  ;;  %v849_v12 = vrot.slane %v7335_v60, 2  ;;  %v850_v42 = vrot.slane %v7527_v37, 2  ;;  %v351_v59 = vld [vmem:[%s7200_s8 + $0x90] sm:$0xff]  ;;  %v6187_v3 = vpack.c.bf16 %v4558_v55, %v4557_v63  ;;  %v4569_v63 = vld [vmem:[%s8851_s3 + $0x100] sm:$0xff] }
  0x58   : > { %6388 = vmatprep.subr.bf16.mxu0 %v6387_v34  ;;  %5812 = vmatmul.mubr.msk.f32.vlgmr.msra.gmra.mrb[0].mxu0 %vm525_vm0, %v7272_v23  ;;  %v853_v16 = vrot.slane %v7566_v9, 2  ;;  %v6395_v49 = vpack.c.bf16 %v4766_v41, %v4765_v30  ;;  %v4559_v37 = vld [vmem:[%s8851_s3 + $0xf0] sm:$0xff]  ;;  %v1794_v26 = vmul.f32 0.2, %v351_v59  ;;  %v855_v35 = vrot.slane %v7386_v32, 2  ;;  %v4777_v30 = vld [vmem:[%s8851_s3 + $0x440] sm:$0xff] }
  0x59   : > { %6390 = vmatpush3.bf16.msra.mxu0 %v6387_v34  ;;  %5814 = vmatprep.mubr.msk.f32.mxu0 %vm525_vm0, %v7293_v33  ;;  %v7668_v34 = vsel %vm833_vm6, %v846_v58, %v847_v51  ;;  %v4767_v9 = vld [vmem:[%s8851_s3 + $0x430] sm:$0xff]  ;;  %v7691_v17 = vsel %vm833_vm6, %v849_v12, %v850_v42  ;;  %v856_v58 = vrot.slane %v7591_v53, 2  ;;  %vm1774_vm8 = vcmp.ge.f32.partialorder %v351_v59, 0.0  ;;  %v4570_v53 = vld [vmem:[%s8851_s3 + $0x108] sm:$0xff] }
  0x5a   : > { %5448 = vmatmul.mubr.msk.f32.vlgmr.msra.gmra.mrb[0].mxu1 %vm525_vm0, %v7632_v28  ;;  %6392 = vmatprep.subr.bf16.mxu0 %v6391_v50  ;;  %v7710_v55 = vsel %vm1774_vm8, %v351_v59, %v1794_v26  ;;  %v4778_v41 = vld [vmem:[%s8851_s3 + $0x448] sm:$0xff]  ;;  %v6195_v42 = vpack.c.bf16 %v4570_v53, %v4569_v63  ;;  %v352_v59 = vld [vmem:[%s7200_s8 + $0x98] sm:$0x3]  ;;  %v433_v63 = vld [vmem:[%s7174_s12 + $0x80] sm:$0xff] }
  0x5b   : > { %6182 = vmatpush3.bf16.msra.mxu1 %v6179_v18  ;;  %5450 = vmatprep.mubr.msk.f32.mxu1 %vm525_vm0, %v7637_v19  ;;  %v852_v18 = vrot.slane %v7362_v14, 2  ;;  %v7721_v12 = vsel %vm833_vm6, %v855_v35, %v856_v58  ;;  %vm1775_vm9 = vcmp.ge.f32.partialorder %v352_v59, 0.0  ;;  %v4781_v35 = vld [vmem:[%s8851_s3 + $0x460] sm:$0xff]  ;;  %v4782_v58 = vld [vmem:[%s8851_s3 + $0x468] sm:$0xff]  ;;  %vm473_vm10 = vcmp.ge.f32.partialorder %v433_v63, 0.0 }
  0x5c   : > { %6184 = vmatprep.subr.bf16.mxu1 %v6183_v47  ;;  %5815 = vmatmul.mubr.msk.f32.gmra.mrb[2].mxu0 %vm525_vm0, %v7325_v48  ;;  %v6411_v53 = vpack.c.bf16 %v4782_v58, %v4781_v35 }
  0x5d   : > { %6394 = vmatpush3.bf16.msra.mxu0 %v6391_v50  ;;  %5817 = vmatprep.mubr.msk.f32.mxu0 %vm525_vm0, %v7342_v1  ;;  %v7698_v51 = vsel %vm833_vm6, %v852_v18, %v853_v16  ;;  %v6191_v50 = vpack.c.bf16 %v4560_v52, %v4559_v37  ;;  %v6403_v18 = vpack.c.bf16 %v4778_v41, %v4777_v30  ;;  %v4572_v16 = vld [vmem:[%s8851_s3 + $0x118] sm:$0xff]  ;;  %v1795_v52 = vmul.f32 0.2, %v352_v59  ;;  %v4575_v30 = vld [vmem:[%s8851_s3 + $0x130] sm:$0xff] }
  0x5e   : > { %5451 = vmatmul.mubr.msk.f32.gmra.mrb[2].mxu1 %vm525_vm0, %v7660_v44  ;;  %6396 = vmatprep.subr.bf16.mxu0 %v6395_v49  ;;  %v4780_v37 = vld [vmem:[%s8851_s3 + $0x458] sm:$0xff] }
  0x5f   : > { %6186 = vmatpush3.bf16.msra.mxu1 %v6183_v47  ;;  %5453 = vmatprep.mubr.msk.f32.mxu1 %vm525_vm0, %v7668_v34  ;;  %v6399_v47 = vpack.c.bf16 %v4768_v13, %v4767_v9  ;;  %v4573_v13 = vld [vmem:[%s8851_s3 + $0x120] sm:$0xff]  ;;  %v4576_v41 = vld [vmem:[%s8851_s3 + $0x138] sm:$0xff] }
  0x60   : > { %6188 = vmatprep.subr.bf16.mxu1 %v6187_v3  ;;  %5818 = vmatmul.mubr.msk.f32.gmra.mrb[4].mxu0 %vm525_vm0, %v7377_v25 }
  0x61   : > { %6398 = vmatpush3.bf16.msra.mxu0 %v6395_v49  ;;  %5820 = vmatprep.mubr.msk.f32.mxu0 %vm525_vm0, %v7398_v56  ;;  %v4779_v49 = vld [vmem:[%s8851_s3 + $0x450] sm:$0xff]  ;;  %v4605_v56 = vld [vmem:[%s8851_s3 + $0x1a0] sm:$0xff] }
  0x62   : > { %5454 = vmatmul.mubr.msk.f32.gmra.mrb[4].mxu1 %vm525_vm0, %v7691_v17  ;;  %6400 = vmatprep.subr.bf16.mxu0 %v6399_v47  ;;  %v6407_v9 = vpack.c.bf16 %v4780_v37, %v4779_v49  ;;  %v6207_v49 = vpack.c.bf16 %v4576_v41, %v4575_v30  ;;  %v4587_v30 = vld [vmem:[%s8851_s3 + $0x150] sm:$0xff]  ;;  %v434_v41 = vld [vmem:[%s7174_s12 + $0x88] sm:$0x3] }
  0x63   : > { %6190 = vmatpush3.bf16.msra.mxu1 %v6187_v3  ;;  %5456 = vmatprep.mubr.msk.f32.mxu1 %vm525_vm0, %v7698_v51  ;;  %v4571_v3 = vld [vmem:[%s8851_s3 + $0x110] sm:$0xff]  ;;  %vm474_vm11 = vcmp.ge.f32.partialorder %v434_v41, 0.0 }
  0x64   : > { %6192 = vmatprep.subr.bf16.mxu1 %v6191_v50  ;;  %5821 = vmatmul.mubr.msk.f32.gmra.mrb[6].mxu0 %vm525_vm0, %v7710_v55  ;;  %v6199_v26 = vpack.c.bf16 %v4572_v16, %v4571_v3  ;;  %v4784_v3 = vld [vmem:[%s8851_s3 + $0x478] sm:$0xff]  ;;  %v493_v16 = vmul.f32 0.2, %v433_v63 }
  0x65   : > { %6402 = vmatpush3.bf16.msra.mxu0 %v6399_v47  ;;  %5839 = vmatprep.mubr.msk.f32.mxu0 %vm525_vm0, %v7269_v22 }
  0x66   : > { %5457 = vmatmul.mubr.msk.f32.gmra.mrb[6].mxu1 %vm525_vm0, %v7721_v12  ;;  %6404 = vmatprep.subr.bf16.mxu0 %v6403_v18  ;;  %v7824_v35 = vsel %vm473_vm10, %v433_v63, %v493_v16  ;;  %v4796_v63 = vld [vmem:[%s8851_s3 + $0x498] sm:$0xff]  ;;  %v4797_v16 = vld [vmem:[%s8851_s3 + $0x4a0] sm:$0xff] }
  0x67   : > { %6194 = vmatpush3.bf16.msra.mxu1 %v6191_v50  ;;  %5475 = vmatprep.mubr.msk.f32.mxu1 %vm525_vm0, %v7226_v61  ;;  %v4574_v61 = vld [vmem:[%s8851_s3 + $0x128] sm:$0xff]  ;;  %v7771_v50 = vsel %vm1775_vm9, %v352_v59, %v1795_v52  ;;  %v4585_v52 = vld [vmem:[%s8851_s3 + $0x140] sm:$0xff] }
  0x68   : > { %6196 = vmatprep.subr.bf16.mxu1 %v6195_v42  ;;  %5840 = vmatmul.mubr.msk.f32.vlgmr.msra.gmra.mrb[0].mxu0 %vm525_vm0, %v7310_v40  ;;  %v6203_v47 = vpack.c.bf16 %v4574_v61, %v4573_v13  ;;  %v2801_v59 = vrot.slane %v7771_v50, 1  ;;  %v4793_v13 = vld [vmem:[%s8851_s3 + $0x480] sm:$0xff]  ;;  %v4794_v61 = vld [vmem:[%s8851_s3 + $0x488] sm:$0xff] }
  0x69   : > { %6406 = vmatpush3.bf16.msra.mxu0 %v6403_v18  ;;  %5842 = vmatprep.mubr.msk.f32.mxu0 %vm525_vm0, %v7319_v43  ;;  %v4783_v18 = vld [vmem:[%s8851_s3 + $0x470] sm:$0xff]  ;;  %v446_v40 = vld [vmem:[%s7870_s24 + $0x48] sm:$0x3] }
  0x6a   : > { %5476 = vmatmul.mubr.msk.f32.vlgmr.msra.gmra.mrb[0].mxu1 %vm525_vm0, %v7237_v5  ;;  %6408 = vmatprep.subr.bf16.mxu0 %v6407_v9  ;;  %v6415_v37 = vpack.c.bf16 %v4784_v3, %v4783_v18  ;;  %v4589_v3 = vld [vmem:[%s8851_s3 + $0x160] sm:$0xff] }
  0x6b   : > { %6198 = vmatpush3.bf16.msra.mxu1 %v6195_v42  ;;  %5478 = vmatprep.mubr.msk.f32.mxu1 %vm525_vm0, %v7284_v29  ;;  %v2800_v42 = vrot.slane %v7710_v55, 1 }
  0x6c   : > { %6200 = vmatprep.subr.bf16.mxu1 %v6199_v26  ;;  %5843 = vmatmul.mubr.msk.f32.gmra.mrb[2].mxu0 %vm525_vm0, %v7351_v8 }
  0x6d   : > { %6410 = vmatpush3.bf16.msra.mxu0 %v6407_v9  ;;  %5845 = vmatprep.mubr.msk.f32.mxu0 %vm525_vm0, %v7368_v20  ;;  %v2802_v9 = vsel %vm369_vm1, %v2800_v42, %v2801_v59  ;;  %v494_v59 = vmul.f32 0.2, %v434_v41 }
  0x6e   : > { %5479 = vmatmul.mubr.msk.f32.gmra.mrb[2].mxu1 %vm525_vm0, %v7307_v39  ;;  %6412 = vmatprep.subr.bf16.mxu0 %v6411_v53 }
  0x6f   : > { %6202 = vmatpush3.bf16.msra.mxu1 %v6199_v26  ;;  %5481 = vmatprep.mubr.msk.f32.mxu1 %vm525_vm0, %v7335_v60  ;;  %v4586_v26 = vld [vmem:[%s8851_s3 + $0x148] sm:$0xff] }
  0x70   : > { %6204 = vmatprep.subr.bf16.mxu1 %v6203_v47  ;;  %5846 = vmatmul.mubr.msk.f32.gmra.mrb[4].mxu0 %vm525_vm0, %v7407_v46  ;;  %v6211_v58 = vpack.c.bf16 %v4586_v26, %v4585_v52  ;;  %v7874_v52 = vsel %vm474_vm11, %v434_v41, %v494_v59  ;;  %v1122_v41 = vrot.slane %v7824_v35, 1 }
  0x71   : > { %6414 = vmatpush3.bf16.msra.mxu0 %v6411_v53  ;;  %5848 = vmatprep.mubr.msk.f32.mxu0 %vm525_vm0, %v7421_v6  ;;  %v6419_v53 = vpack.c.bf16 %v4794_v61, %v4793_v13  ;;  %v4795_v6 = vld [vmem:[%s8851_s3 + $0x490] sm:$0xff]  ;;  %v4592_v13 = vld [vmem:[%s8851_s3 + $0x178] sm:$0xff]  ;;  %v2927_v61 = vrot.slane %v7710_v55, 2  ;;  %v1123_v55 = vrot.slane %v7874_v52, 1 }
  0x72   : > { %5482 = vmatmul.mubr.msk.f32.gmra.mrb[4].mxu1 %vm525_vm0, %v7362_v14  ;;  %6416 = vmatprep.subr.bf16.mxu0 %v6415_v37  ;;  %v6423_v18 = vpack.c.bf16 %v4796_v63, %v4795_v6  ;;  %v439_v6 = vld [vmem:[%s7870_s24 + $0x10] sm:$0xff] }
  0x73   : > { %6206 = vmatpush3.bf16.msra.mxu1 %v6203_v47  ;;  %5484 = vmatprep.mubr.msk.f32.mxu1 %vm525_vm0, %v7386_v32  ;;  %v4588_v47 = vld [vmem:[%s8851_s3 + $0x158] sm:$0xff]  ;;  %vm3056_vm13 = vcmp.ge.f32.partialorder %v439_v6, 0.0 }
  0x74   : > { %6208 = vmatprep.subr.bf16.mxu1 %v6207_v49  ;;  %5849 = vmatmul.mubr.msk.f32.gmra.mrb[6].mxu0 %vm525_vm0, %v2802_v9  ;;  %v6215_v42 = vpack.c.bf16 %v4588_v47, %v4587_v30  ;;  %v4591_v9 = vld [vmem:[%s8851_s3 + $0x170] sm:$0xff]  ;;  %v4800_v30 = vld [vmem:[%s8851_s3 + $0x4b8] sm:$0xff]  ;;  %v437_v47 = vld [vmem:[%s7870_s24] sm:$0xff] }
  0x75   : > { %6418 = vmatpush3.bf16.msra.mxu0 %v6415_v37  ;;  %5867 = vmatprep.mubr.msk.f32.mxu0 %vm525_vm0, %v7444_v21  ;;  %v3074_v59 = vmul.f32 0.2, %v437_v47  ;;  %vm3054_vm12 = vcmp.ge.f32.partialorder %v437_v47, 0.0 }
  0x76   : > { %5485 = vmatmul.mubr.msk.f32.gmra.mrb[6].mxu1 %vm525_vm0, %v7824_v35  ;;  %6420 = vmatprep.subr.bf16.mxu0 %v6419_v53 }
  0x77   : > { %6210 = vmatpush3.bf16.msra.mxu1 %v6207_v49  ;;  %5503 = vmatprep.mubr.msk.f32.mxu1 %vm525_vm0, %v7468_v36  ;;  %v4590_v36 = vld [vmem:[%s8851_s3 + $0x168] sm:$0xff] }
  0x78   : > { %6212 = vmatprep.subr.bf16.mxu1 %v6211_v58  ;;  %5868 = vmatmul.mubr.msk.f32.vlgmr.msra.gmra.mrb[0].mxu0 %vm525_vm0, %v7477_v27  ;;  %v4798_v49 = vld [vmem:[%s8851_s3 + $0x4a8] sm:$0xff]  ;;  %v6219_v37 = vpack.c.bf16 %v4590_v36, %v4589_v3  ;;  %v441_v3 = vld [vmem:[%s7870_s24 + $0x20] sm:$0xff] }
  0x79   : > { %6422 = vmatpush3.bf16.msra.mxu0 %v6419_v53  ;;  %5870 = vmatprep.mubr.msk.f32.mxu0 %vm525_vm0, %v7503_v11  ;;  %v6427_v26 = vpack.c.bf16 %v4798_v49, %v4797_v16  ;;  %v4799_v53 = vld [vmem:[%s8851_s3 + $0x4b0] sm:$0xff]  ;;  %v3076_v16 = vmul.f32 0.2, %v439_v6  ;;  %v4809_v49 = vld [vmem:[%s8851_s3 + $0x4c0] sm:$0xff]  ;;  %vm3058_vm14 = vcmp.ge.f32.partialorder %v441_v3, 0.0 }
  0x7a   : > { %5504 = vmatmul.mubr.msk.f32.vlgmr.msra.gmra.mrb[0].mxu1 %vm525_vm0, %v7483_v54  ;;  %6424 = vmatprep.subr.bf16.mxu0 %v6423_v18  ;;  %v6431_v63 = vpack.c.bf16 %v4800_v30, %v4799_v53  ;;  %v7924_v53 = vsel %vm369_vm1, %v1122_v41, %v1123_v55  ;;  %v3078_v30 = vmul.f32 0.2, %v441_v3  ;;  %v4811_v41 = vld [vmem:[%s8851_s3 + $0x4d0] sm:$0xff]  ;;  %v4812_v55 = vld [vmem:[%s8851_s3 + $0x4d8] sm:$0xff]  ;;  %v438_v11 = vld [vmem:[%s7870_s24 + $0x8] sm:$0x3] }
  0x7b   : > { %6214 = vmatpush3.bf16.msra.mxu1 %v6211_v58  ;;  %5506 = vmatprep.mubr.msk.f32.mxu1 %vm525_vm0, %v7513_v57  ;;  %v2928_v58 = vrot.slane %v7771_v50, 2  ;;  %v6223_v50 = vpack.c.bf16 %v4592_v13, %v4591_v9  ;;  %v4810_v9 = vld [vmem:[%s8851_s3 + $0x4c8] sm:$0xff]  ;;  %v443_v13 = vld [vmem:[%s7870_s24 + $0x30] sm:$0xff]  ;;  %vm3055_vm7 = vcmp.ge.f32.partialorder %v438_v11, 0.0 }
  0x7c   : > { %6216 = vmatprep.subr.bf16.mxu1 %v6215_v42  ;;  %5871 = vmatmul.mubr.msk.f32.gmra.mrb[2].mxu0 %vm525_vm0, %v7525_v31  ;;  %v453_v31 = vld [vmem:[%s7870_s24 + $0x80] sm:$0xff]  ;;  %vm3060_vm15 = vcmp.ge.f32.partialorder %v443_v13, 0.0  ;;  %v7976_v27 = vsel %vm3058_vm14, %v441_v3, %v3078_v30  ;;  %v451_v3 = vld [vmem:[%s7870_s24 + $0x70] sm:$0xff]  ;;  %v3075_v30 = vmul.f32 0.2, %v438_v11 }
  0x7d   : > { %6426 = vmatpush3.bf16.msra.mxu0 %v6423_v18  ;;  %5873 = vmatprep.mubr.msk.f32.mxu0 %vm525_vm0, %v7552_v45  ;;  %v4602_v18 = vld [vmem:[%s8851_s3 + $0x188] sm:$0xff]  ;;  %v2929_v36 = vsel %vm833_vm6, %v2927_v61, %v2928_v58  ;;  %v4604_v61 = vld [vmem:[%s8851_s3 + $0x198] sm:$0xff]  ;;  %v445_v58 = vld [vmem:[%s7870_s24 + $0x40] sm:$0xff]  ;;  %vm3070_vm4 = vcmp.ge.f32.partialorder %v453_v31, 0.0  ;;  %vm3068_vm10 = vcmp.ge.f32.partialorder %v451_v3, 0.0 }
  0x7e   : > { %5507 = vmatmul.mubr.msk.f32.gmra.mrb[2].mxu1 %vm525_vm0, %v7542_v0  ;;  %6428 = vmatprep.subr.bf16.mxu0 %v6427_v26  ;;  %v447_v45 = vld [vmem:[%s7870_s24 + $0x50] sm:$0xff]  ;;  %vm3062_vm2 = vcmp.ge.f32.partialorder %v445_v58, 0.0 }
  0x7f   : > { %6218 = vmatpush3.bf16.msra.mxu1 %v6215_v42  ;;  %5509 = vmatprep.mubr.msk.f32.mxu1 %vm525_vm0, %v7549_v4  ;;  %v4601_v42 = vld [vmem:[%s8851_s3 + $0x180] sm:$0xff]  ;;  %vm3064_vm3 = vcmp.ge.f32.partialorder %v447_v45, 0.0 }
  0x80   : > { %6220 = vmatprep.subr.bf16.mxu1 %v6219_v37  ;;  %5874 = vmatmul.mubr.msk.f32.gmra.mrb[4].mxu0 %vm525_vm0, %v7574_v38  ;;  %v4606_v38 = vld [vmem:[%s8851_s3 + $0x1a8] sm:$0xff] }
  0x81   : > { %6430 = vmatpush3.bf16.msra.mxu0 %v6427_v26  ;;  %v4603_v26 = vld [vmem:[%s8851_s3 + $0x190] sm:$0xff]  ;;  %5876 = vmatprep.mubr.msk.f32.mxu0 %vm525_vm0, %v7599_v62  ;;  %v7946_v62 = vsel %vm3054_vm12, %v437_v47, %v3074_v59  ;;  %v7957_v47 = vsel %vm3056_vm13, %v439_v6, %v3076_v16  ;;  %v3082_v59 = vmul.f32 0.2, %v445_v58  ;;  %v7978_v21 = vpack.c.bf16 %v4606_v38, %v4605_v56  ;;  %v454_v6 = vld [vmem:[%s7870_s24 + $0x88] sm:$0x3] }
  0x82   : > { %5510 = vmatmul.mubr.msk.f32.gmra.mrb[4].mxu1 %vm525_vm0, %v7595_v7  ;;  %6432 = vmatprep.subr.bf16.mxu0 %v6431_v63  ;;  %v6231_v16 = vpack.c.bf16 %v4604_v61, %v4603_v26  ;;  %v3084_v61 = vmul.f32 0.2, %v447_v45  ;;  %vm3071_vm8 = vcmp.ge.f32.partialorder %v454_v6, 0.0  ;;  %vm3063_vm13 = vcmp.ge.f32.partialorder %v446_v40, 0.0 }
  0x83   : > { %6222 = vmatpush3.bf16.msra.mxu1 %v6219_v37  ;;  %5512 = vmatprep.mubr.msk.f32.mxu1 %vm525_vm0, %v7611_v24  ;;  %v6227_v37 = vpack.c.bf16 %v4602_v18, %v4601_v42  ;;  %v6435_v42 = vpack.c.bf16 %v4810_v9, %v4809_v49  ;;  %v3080_v18 = vmul.f32 0.2, %v443_v13  ;;  %v4814_v49 = vld [vmem:[%s8851_s3 + $0x4e8] sm:$0xff]  ;;  %v7970_v9 = vld [vmem:[%s7870_s24 + $0x60] sm:$0xff]  ;;  %v7990_v56 = vsel %vm3062_vm2, %v445_v58, %v3082_v59 }
  0x84   : > { %6224 = vmatprep.subr.bf16.mxu1 %v6223_v50  ;;  %5877 = vmatmul.mubr.msk.f32.gmra.mrb[6].mxu0 %vm525_vm0, %v2929_v36  ;;  %v4813_v36 = vld [vmem:[%s8851_s3 + $0x4e0] sm:$0xff]  ;;  %vm3066_vm5 = vcmp.ge.f32.partialorder %v7970_v9, 0.0  ;;  %v1250_v58 = vrot.slane %v7874_v52, 2  ;;  %v8008_v59 = vsel %vm3064_vm3, %v447_v45, %v3084_v61  ;;  %v4608_v52 = vld [vmem:[%s8851_s3 + $0x1b8] sm:$0xff]  ;;  %v4815_v45 = vld [vmem:[%s8851_s3 + $0x4f0] sm:$0xff]  ;;  %v8026_v61 = vsel %vm3055_vm7, %v438_v11, %v3075_v30 }
  0x85   : > { %6434 = vmatpush3.bf16.msra.mxu0 %v6431_v63  ;;  %5895 = vmatprep.mubr.msk.f32.mxu0 %vm525_vm0, %v7946_v62  ;;  %v3090_v63 = vmul.f32 0.2, %v453_v31  ;;  %v7985_v26 = vsel %vm3060_vm15, %v443_v13, %v3080_v18  ;;  %v6443_v38 = vpack.c.bf16 %v4814_v49, %v4813_v36  ;;  %v3086_v13 = vmul.f32 0.2, %v7970_v9  ;;  %v4607_v36 = vld [vmem:[%s8851_s3 + $0x1b0] sm:$0xff] }
  0x86   : > { %5513 = vmatmul.mubr.msk.f32.gmra.mrb[6].mxu1 %vm525_vm0, %v7924_v53  ;;  %6436 = vmatprep.subr.bf16.mxu0 %v6435_v42  ;;  %v3269_v15 = vrot.slane %v8026_v61, 1 }
  0x87   : > { %6226 = vmatpush3.bf16.msra.mxu1 %v6223_v50  ;;  %5531 = vmatprep.mubr.msk.f32.mxu1 %vm525_vm0, %v7632_v28  ;;  %v6439_v50 = vpack.c.bf16 %v4812_v55, %v4811_v41  ;;  %v440_v28 = vld [vmem:[%s7870_s24 + $0x18] sm:$0x3]  ;;  %v442_v41 = vld [vmem:[%s7870_s24 + $0x28] sm:$0x3]  ;;  %v8003_v18 = vsel %vm3070_vm4, %v453_v31, %v3090_v63  ;;  %v3088_v31 = vmul.f32 0.2, %v451_v3  ;;  %v8042_v11 = vsel %vm3066_vm5, %v7970_v9, %v3086_v13 }
  0x88   : > { %6228 = vmatprep.subr.bf16.mxu1 %v6227_v37  ;;  %5896 = vmatmul.mubr.msk.f32.vlgmr.msra.gmra.mrb[0].mxu0 %vm525_vm0, %v7957_v47  ;;  %v3077_v55 = vmul.f32 0.2, %v440_v28  ;;  %vm3057_vm9 = vcmp.ge.f32.partialorder %v440_v28, 0.0  ;;  %v3718_v49 = vrot.slane %v8003_v18, 1  ;;  %v4816_v63 = vld [vmem:[%s8851_s3 + $0x4f8] sm:$0xff]  ;;  %v3845_v20 = vrot.slane %v8003_v18, 2 }
  0x89   : > { %6438 = vmatpush3.bf16.msra.mxu0 %v6435_v42  ;;  %5898 = vmatprep.mubr.msk.f32.mxu0 %vm525_vm0, %v7976_v27  ;;  %v444_v42 = vld [vmem:[%s7870_s24 + $0x38] sm:$0x3]  ;;  %v3079_v46 = vmul.f32 0.2, %v442_v41  ;;  %vm3059_vm11 = vcmp.ge.f32.partialorder %v442_v41, 0.0  ;;  %v4618_v9 = vld [vmem:[%s8851_s3 + $0x1c8] sm:$0xff] }
  0x8a   : > { %5532 = vmatmul.mubr.msk.f32.vlgmr.msra.gmra.mrb[0].mxu1 %vm525_vm0, %v7637_v19  ;;  %6440 = vmatprep.subr.bf16.mxu0 %v6439_v50  ;;  %v3081_v43 = vmul.f32 0.2, %v444_v42  ;;  %vm3061_vm12 = vcmp.ge.f32.partialorder %v444_v42, 0.0  ;;  %v4825_v13 = vld [vmem:[%s8851_s3 + $0x500] sm:$0xff] }
  0x8b   : > { %6230 = vmatpush3.bf16.msra.mxu1 %v6227_v37  ;;  %5534 = vmatprep.mubr.msk.f32.mxu1 %vm525_vm0, %v7660_v44  ;;  %v3091_v37 = vmul.f32 0.2, %v454_v6 }
  0x8c   : > { %6232 = vmatprep.subr.bf16.mxu1 %v6231_v16  ;;  %5899 = vmatmul.mubr.msk.f32.gmra.mrb[2].mxu0 %vm525_vm0, %v7985_v26 }
  0x8d   : > { %6442 = vmatpush3.bf16.msra.mxu0 %v6439_v50  ;;  %v3111_v8 = vsel %vm3071_vm8, %v454_v6, %v3091_v37  ;;  %v8033_v50 = vsel %vm3057_vm9, %v440_v28, %v3077_v55  ;;  %5901 = vmatprep.mubr.msk.f32.mxu0 %vm525_vm0, %v7990_v56  ;;  %v6239_v6 = vpack.c.bf16 %v4608_v52, %v4607_v36  ;;  %v448_v28 = vld [vmem:[%s7870_s24 + $0x58] sm:$0x3] }
  0x8e   : > { %5535 = vmatmul.mubr.msk.f32.gmra.mrb[2].mxu1 %vm525_vm0, %v7668_v34  ;;  %v3719_v22 = vrot.slane %v3111_v8, 1  ;;  %v3846_v30 = vrot.slane %v3111_v8, 2  ;;  %6444 = vmatprep.subr.bf16.mxu0 %v6443_v38  ;;  %v8051_v55 = vsel %vm3068_vm10, %v451_v3, %v3088_v31  ;;  %v6447_v37 = vpack.c.bf16 %v4816_v63, %v4815_v45  ;;  %v4826_v8 = vld [vmem:[%s8851_s3 + $0x508] sm:$0xff]  ;;  %v452_v63 = vld [vmem:[%s7870_s24 + $0x78] sm:$0x3] }
  0x8f   : > { %6234 = vmatpush3.bf16.msra.mxu1 %v6231_v16  ;;  %5537 = vmatprep.mubr.msk.f32.mxu1 %vm525_vm0, %v7691_v17  ;;  %v4617_v16 = vld [vmem:[%s8851_s3 + $0x1c0] sm:$0xff]  ;;  %v3272_v3 = vrot.slane %v8033_v50, 1  ;;  %v8070_v52 = vsel %vm3059_vm11, %v442_v41, %v3079_v46  ;;  %v3083_v31 = vmul.f32 0.2, %v446_v40  ;;  %v3085_v46 = vmul.f32 0.2, %v448_v28 }
  0x90   : > { %6236 = vmatprep.subr.bf16.mxu1 %v7978_v21  ;;  %5902 = vmatmul.mubr.msk.f32.gmra.mrb[4].mxu0 %vm525_vm0, %v8008_v59  ;;  %v8064_v36 = vsel %vm369_vm1, %v3718_v49, %v3719_v22  ;;  %v8073_v45 = vsel %vm833_vm6, %v3845_v20, %v3846_v30  ;;  %v8903_v22 = vrot.slane %v7824_v35, 2  ;;  %v450_v41 = vld [vmem:[%s7870_s24 + $0x68] sm:$0x3]  ;;  %v6243_v20 = vpack.c.bf16 %v4618_v9, %v4617_v16  ;;  %v4620_v16 = vld [vmem:[%s8851_s3 + $0x1d8] sm:$0xff] }
  0x91   : > { %8901 = vst [vmem:[#allocation25_spill] sm:$0xff] %v8064_v36  ;;  %6446 = vmatpush3.bf16.msra.mxu0 %v6443_v38  ;;  %8902 = vst [vmem:[#allocation26_spill] sm:$0xff] %v8073_v45  ;;  %v8084_v38 = vsel %vm3061_vm12, %v444_v42, %v3081_v43  ;;  %5904 = vmatprep.mubr.msk.f32.mxu0 %vm525_vm0, %v8042_v11  ;;  %vm3065_vm14 = vcmp.ge.f32.partialorder %v448_v28, 0.0  ;;  %v3274_v42 = vrot.slane %v7976_v27, 1  ;;  %v3275_v30 = vrot.slane %v8070_v52, 1  ;;  %v4828_v45 = vld [vmem:[%s8851_s3 + $0x518] sm:$0xff] }
  0x92   : > { %5538 = vmatmul.mubr.msk.f32.gmra.mrb[4].mxu1 %vm525_vm0, %v7698_v51  ;;  %v8081_v49 = vsel %vm833_vm6, %v8903_v22, %v1250_v58  ;;  %6448 = vmatprep.subr.bf16.mxu0 %v6447_v37  ;;  %v8904_v58 = vrot.slane %v7946_v62, 1  ;;  %v4619_v22 = vld [vmem:[%s8851_s3 + $0x1d0] sm:$0xff]  ;;  %v3277_v9 = vrot.slane %v7985_v26, 1  ;;  %v8119_v25 = vsel %vm3063_vm13, %v446_v40, %v3083_v31  ;;  %v4621_v31 = vld [vmem:[%s8851_s3 + $0x1e0] sm:$0xff] }
  0x93   : > { %6238 = vmatpush3.bf16.msra.mxu1 %v7978_v21  ;;  %5540 = vmatprep.mubr.msk.f32.mxu1 %vm525_vm0, %v7721_v12  ;;  %v6451_v21 = vpack.c.bf16 %v4826_v8, %v4825_v13  ;;  %v3278_v8 = vrot.slane %v8084_v38, 1  ;;  %v3087_v36 = vmul.f32 0.2, %v450_v41  ;;  %vm3067_vm15 = vcmp.ge.f32.partialorder %v450_v41, 0.0 }
  0x94   : > { %6240 = vmatprep.subr.bf16.mxu1 %v6239_v6  ;;  %5905 = vmatmul.mubr.msk.f32.gmra.mrb[6].mxu0 %vm525_vm0, %v8051_v55  ;;  %v3270_v43 = vsel %vm369_vm1, %v8904_v58, %v3269_v15  ;;  %v8905_v15 = vrot.slane %v7957_v47, 1  ;;  %v4827_v58 = vld [vmem:[%s8851_s3 + $0x510] sm:$0xff]  ;;  %vm3069_vm2 = vcmp.ge.f32.partialorder %v452_v63, 0.0  ;;  %v8130_v40 = vsel %vm369_vm1, %v3274_v42, %v3275_v30  ;;  %v4829_v30 = vld [vmem:[%s8851_s3 + $0x520] sm:$0xff] }
  0x95   : > { %6450 = vmatpush3.bf16.msra.mxu0 %v6447_v37  ;;  %v8124_v37 = vsel %vm3065_vm14, %v448_v28, %v3085_v46  ;;  %5923 = vmatprep.mubr.msk.f32.mxu0 %vm525_vm0, %v3270_v43  ;;  %v3281_v28 = vrot.slane %v8119_v25, 1  ;;  %v4622_v46 = vld [vmem:[%s8851_s3 + $0x1e8] sm:$0xff]  ;;  %v8143_v43 = vsel %vm369_vm1, %v3277_v9, %v3278_v8  ;;  %v435_v9 = vld [vmem:[%s7174_s12 + $0x90] sm:$0xff]  ;;  %v4624_v8 = vld [vmem:[%s8851_s3 + $0x1f8] sm:$0xff] }
  0x96   : > { %5541 = vmatmul.mubr.msk.f32.gmra.mrb[6].mxu1 %vm525_vm0, %v8081_v49  ;;  %v8109_v13 = vsel %vm369_vm1, %v8905_v15, %v3272_v3  ;;  %v3089_v3 = vmul.f32 0.2, %v452_v63  ;;  %v6247_v15 = vpack.c.bf16 %v4620_v16, %v4619_v22  ;;  %6452 = vmatprep.subr.bf16.mxu0 %v6451_v21  ;;  %v3284_v42 = vrot.slane %v8124_v37, 1  ;;  %v4830_v22 = vld [vmem:[%s8851_s3 + $0x528] sm:$0xff] }
  0x97   : > { %6242 = vmatpush3.bf16.msra.mxu1 %v6239_v6  ;;  %5559 = vmatprep.mubr.msk.f32.mxu1 %vm525_vm0, %v7237_v5  ;;  %v6455_v6 = vpack.c.bf16 %v4828_v45, %v4827_v58  ;;  %v3280_v5 = vrot.slane %v7990_v56, 1  ;;  %v3283_v45 = vrot.slane %v8008_v59, 1  ;;  %v8154_v16 = vsel %vm3067_vm15, %v450_v41, %v3087_v36 }
  0x98   : > { %6244 = vmatprep.subr.bf16.mxu1 %v6243_v20  ;;  %5924 = vmatmul.mubr.msk.f32.vlgmr.msra.gmra.mrb[0].mxu0 %vm525_vm0, %v8109_v13  ;;  %v6459_v41 = vpack.c.bf16 %v4830_v22, %v4829_v30  ;;  %vm475_vm3 = vcmp.ge.f32.partialorder %v435_v9, 0.0  ;;  %v4634_v30 = vld [vmem:[%s8851_s3 + $0x208] sm:$0xff] }
  0x99   : > { %6454 = vmatpush3.bf16.msra.mxu0 %v6451_v21  ;;  %5926 = vmatprep.mubr.msk.f32.mxu0 %vm525_vm0, %v8130_v40  ;;  %v6251_v21 = vpack.c.bf16 %v4622_v46, %v4621_v31  ;;  %v8167_v36 = vsel %vm369_vm1, %v3280_v5, %v3281_v28  ;;  %v8180_v58 = vsel %vm369_vm1, %v3283_v45, %v3284_v42  ;;  %v4831_v28 = vld [vmem:[%s8851_s3 + $0x530] sm:$0xff]  ;;  %v4832_v31 = vld [vmem:[%s8851_s3 + $0x538] sm:$0xff]  ;;  %v3430_v46 = vrot.slane %v7946_v62, 2 }
  0x9a   : > { %5560 = vmatmul.mubr.msk.f32.vlgmr.msra.gmra.mrb[0].mxu1 %vm525_vm0, %v7284_v29  ;;  %v8159_v29 = vsel %vm3069_vm2, %v452_v63, %v3089_v3  ;;  %6456 = vmatprep.subr.bf16.mxu0 %v6455_v6  ;;  %v4623_v63 = vld [vmem:[%s8851_s3 + $0x1f0] sm:$0xff]  ;;  %v3289_v3 = vrot.slane %v8051_v55, 1  ;;  %v3431_v42 = vrot.slane %v8026_v61, 2  ;;  %v3433_v62 = vrot.slane %v7957_v47, 2  ;;  %v4841_v61 = vld [vmem:[%s8851_s3 + $0x540] sm:$0xff] }
  0x9b   : > { %6246 = vmatpush3.bf16.msra.mxu1 %v6243_v20  ;;  %5562 = vmatprep.mubr.msk.f32.mxu1 %vm525_vm0, %v7307_v39  ;;  %v3286_v20 = vrot.slane %v8042_v11, 1  ;;  %v3287_v39 = vrot.slane %v8154_v16, 1  ;;  %v3290_v5 = vrot.slane %v8159_v29, 1 }
  0x9c   : > { %6248 = vmatprep.subr.bf16.mxu1 %v6247_v15  ;;  %5927 = vmatmul.mubr.msk.f32.gmra.mrb[2].mxu0 %vm525_vm0, %v8143_v43 }
  0x9d   : > { %6458 = vmatpush3.bf16.msra.mxu0 %v6455_v6  ;;  %5929 = vmatprep.mubr.msk.f32.mxu0 %vm525_vm0, %v8167_v36  ;;  %v6255_v6 = vpack.c.bf16 %v4624_v8, %v4623_v63  ;;  %v8198_v45 = vsel %vm369_vm1, %v3286_v20, %v3287_v39  ;;  %v8211_v22 = vsel %vm369_vm1, %v3289_v3, %v3290_v5  ;;  %v3434_v20 = vrot.slane %v8033_v50, 2  ;;  %v4842_v39 = vld [vmem:[%s8851_s3 + $0x548] sm:$0xff]  ;;  %v436_v3 = vld [vmem:[%s7174_s12 + $0x98] sm:$0x3]  ;;  %s8796_s12 = scalar_lea.sflag [#allocation3], %s299_s23 }
  0x9e   : > { %5563 = vmatmul.mubr.msk.f32.gmra.mrb[2].mxu1 %vm525_vm0, %v7335_v60  ;;  %v495_v60 = vmul.f32 0.2, %v435_v9  ;;  %6460 = vmatprep.subr.bf16.mxu0 %v6459_v41  ;;  %v3437_v63 = vrot.slane %v8070_v52, 2  ;;  %v6467_v8 = vpack.c.bf16 %v4842_v39, %v4841_v61  ;;  %v3439_v5 = vrot.slane %v7985_v26, 2  ;;  %v4845_v61 = vld [vmem:[%s8851_s3 + $0x560] sm:$0xff]  ;;  %v4846_v39 = vld [vmem:[%s8851_s3 + $0x568] sm:$0xff] }
  0x9f   : > { %6250 = vmatpush3.bf16.msra.mxu1 %v6247_v15  ;;  %5565 = vmatprep.mubr.msk.f32.mxu1 %vm525_vm0, %v7362_v14  ;;  %v6463_v15 = vpack.c.bf16 %v4832_v31, %v4831_v28  ;;  %v4633_v14 = vld [vmem:[%s8851_s3 + $0x200] sm:$0xff]  ;;  %v8242_v52 = vsel %vm833_vm6, %v3433_v62, %v3434_v20  ;;  %v3440_v28 = vrot.slane %v8084_v38, 2  ;;  %v4843_v31 = vld [vmem:[%s8851_s3 + $0x550] sm:$0xff]  ;;  %v496_v38 = vmul.f32 0.2, %v436_v3 }
  0xa0   : > { %6252 = vmatprep.subr.bf16.mxu1 %v6251_v21  ;;  %5930 = vmatmul.mubr.msk.f32.gmra.mrb[4].mxu0 %vm525_vm0, %v8180_v58  ;;  %v6259_v50 = vpack.c.bf16 %v4634_v30, %v4633_v14  ;;  %v3442_v14 = vrot.slane %v7990_v56, 2  ;;  %v4638_v30 = vld [vmem:[%s8851_s3 + $0x228] sm:$0xff]  ;;  %vm476_vm4 = vcmp.ge.f32.partialorder %v436_v3, 0.0  ;;  %v3445_v20 = vrot.slane %v8008_v59, 2 }
  0xa1   : > { %6462 = vmatpush3.bf16.msra.mxu0 %v6459_v41  ;;  %5932 = vmatprep.mubr.msk.f32.mxu0 %vm525_vm0, %v8198_v45  ;;  %v3436_v41 = vrot.slane %v7976_v27, 2  ;;  %v8271_v62 = vsel %vm833_vm6, %v3439_v5, %v3440_v28  ;;  %v4848_v5 = vld [vmem:[%s8851_s3 + $0x578] sm:$0xff] }
  0xa2   : > { %5566 = vmatmul.mubr.msk.f32.gmra.mrb[4].mxu1 %vm525_vm0, %v7386_v32  ;;  %v8223_v32 = vsel %vm475_vm3, %v435_v9, %v495_v60  ;;  %6464 = vmatprep.subr.bf16.mxu0 %v6463_v15  ;;  %v4636_v9 = vld [vmem:[%s8851_s3 + $0x218] sm:$0xff] }
  0xa3   : > { %6254 = vmatpush3.bf16.msra.mxu1 %v6251_v21  ;;  %5568 = vmatprep.mubr.msk.f32.mxu1 %vm525_vm0, %v7824_v35  ;;  %v3432_v21 = vsel %vm833_vm6, %v3430_v46, %v3431_v42  ;;  %v4635_v35 = vld [vmem:[%s8851_s3 + $0x210] sm:$0xff]  ;;  %v4844_v60 = vld [vmem:[%s8851_s3 + $0x558] sm:$0xff]  ;;  %v8256_v46 = vsel %vm833_vm6, %v3436_v41, %v3437_v63  ;;  %v8285_v41 = vsel %vm476_vm4, %v436_v3, %v496_v38  ;;  %v3452_v3 = vrot.slane %v8159_v29, 2 }
  0xa4   : > { %6256 = vmatprep.subr.bf16.mxu1 %v6255_v6  ;;  %5933 = vmatmul.mubr.msk.f32.gmra.mrb[6].mxu0 %vm525_vm0, %v8211_v22  ;;  %v6471_v42 = vpack.c.bf16 %v4844_v60, %v4843_v31  ;;  %v6475_v63 = vpack.c.bf16 %v4846_v39, %v4845_v61  ;;  %v1502_v28 = vrot.slane %v8223_v32, 1 }
  0xa5   : > { %6466 = vmatpush3.bf16.msra.mxu0 %v6463_v15  ;;  %5951 = vmatprep.mubr.msk.f32.mxu0 %vm525_vm0, %v3432_v21  ;;  %v6263_v15 = vpack.c.bf16 %v4636_v9, %v4635_v35  ;;  %v3449_v21 = vrot.slane %v8154_v16, 2  ;;  %v3451_v9 = vrot.slane %v8051_v55, 2  ;;  %v4847_v16 = vld [vmem:[%s8851_s3 + $0x570] sm:$0xff] }
  0xa6   : > { %5569 = vmatmul.mubr.msk.f32.gmra.mrb[6].mxu1 %vm525_vm0, %v8223_v32  ;;  %6468 = vmatprep.subr.bf16.mxu0 %v6467_v8  ;;  %v6479_v60 = vpack.c.bf16 %v4848_v5, %v4847_v16  ;;  %v1630_v16 = vrot.slane %v8285_v41, 2 }
  0xa7   : > { %6258 = vmatpush3.bf16.msra.mxu1 %v6255_v6  ;;  %5587 = vmatprep.mubr.msk.f32.mxu1 %vm525_vm0, %v7483_v54  ;;  %v3443_v6 = vrot.slane %v8119_v25, 2  ;;  %v4637_v54 = vld [vmem:[%s8851_s3 + $0x220] sm:$0xff]  ;;  %v3446_v25 = vrot.slane %v8124_v37, 2  ;;  %v8333_v38 = vsel %vm833_vm6, %v3451_v9, %v3452_v3  ;;  %v4864_v9 = vld [vmem:[%s8851_s3 + $0x5b8] sm:$0xff]  ;;  %v1629_v3 = vrot.slane %v8223_v32, 2 }
  0xa8   : > { %6260 = vmatprep.subr.bf16.mxu1 %v6259_v50  ;;  %5952 = vmatmul.mubr.msk.f32.vlgmr.msra.gmra.mrb[0].mxu0 %vm525_vm0, %v8242_v52  ;;  %v4665_v32 = vld [vmem:[%s8851_s3 + $0x280] sm:$0xff] }
  0xa9   : > { %6470 = vmatpush3.bf16.msra.mxu0 %v6467_v8  ;;  %5954 = vmatprep.mubr.msk.f32.mxu0 %vm525_vm0, %v8256_v46  ;;  %v8290_v37 = vsel %vm833_vm6, %v3442_v14, %v3443_v6  ;;  %v4640_v8 = vld [vmem:[%s8851_s3 + $0x238] sm:$0xff]  ;;  %v8303_v35 = vsel %vm833_vm6, %v3445_v20, %v3446_v25  ;;  %v4858_v14 = vld [vmem:[%s8851_s3 + $0x588] sm:$0xff]  ;;  %v4859_v20 = vld [vmem:[%s8851_s3 + $0x590] sm:$0xff] }
  0xaa   : > { %5588 = vmatmul.mubr.msk.f32.vlgmr.msra.gmra.mrb[0].mxu1 %vm525_vm0, %v7513_v57  ;;  %v6267_v57 = vpack.c.bf16 %v4638_v30, %v4637_v54  ;;  %6472 = vmatprep.subr.bf16.mxu0 %v6471_v42  ;;  %v4651_v30 = vld [vmem:[%s8851_s3 + $0x250] sm:$0xff]  ;;  %v4860_v25 = vld [vmem:[%s8851_s3 + $0x598] sm:$0xff] }
  0xab   : > { %6262 = vmatpush3.bf16.msra.mxu1 %v6259_v50  ;;  %5590 = vmatprep.mubr.msk.f32.mxu1 %vm525_vm0, %v7542_v0  ;;  %v3448_v50 = vrot.slane %v8042_v11, 2  ;;  %v4639_v0 = vld [vmem:[%s8851_s3 + $0x230] sm:$0xff]  ;;  %v6487_v39 = vpack.c.bf16 %v4860_v25, %v4859_v20  ;;  %v4878_v25 = vld [vmem:[%s8851_s3 + $0x5e8] sm:$0xff] }
  0xac   : > { %6264 = vmatprep.subr.bf16.mxu1 %v6263_v15  ;;  %5955 = vmatmul.mubr.msk.f32.gmra.mrb[2].mxu0 %vm525_vm0, %v8271_v62  ;;  %v6271_v29 = vpack.c.bf16 %v4640_v8, %v4639_v0  ;;  %v4656_v0 = vld [vmem:[%s8851_s3 + $0x278] sm:$0xff]  ;;  %v333_v8 = vld [vmem:[%s7200_s8] sm:$0xff] }
  0xad   : > { %6474 = vmatpush3.bf16.msra.mxu0 %v6471_v42  ;;  %5957 = vmatprep.mubr.msk.f32.mxu0 %vm525_vm0, %v8290_v37  ;;  %v8322_v31 = vsel %vm833_vm6, %v3448_v50, %v3449_v21  ;;  %v4857_v42 = vld [vmem:[%s8851_s3 + $0x580] sm:$0xff]  ;;  %v4655_v21 = vld [vmem:[%s8851_s3 + $0x270] sm:$0xff]  ;;  %v1776_v5 = vmul.f32 0.2, %v333_v8  ;;  %vm1756_vm5 = vcmp.ge.f32.partialorder %v333_v8, 0.0 }
  0xae   : > { %5591 = vmatmul.mubr.msk.f32.gmra.mrb[2].mxu1 %vm525_vm0, %v7549_v4  ;;  %v1503_v4 = vrot.slane %v8285_v41, 1  ;;  %6476 = vmatprep.subr.bf16.mxu0 %v6475_v63  ;;  %v6483_v54 = vpack.c.bf16 %v4858_v14, %v4857_v42  ;;  %v4873_v41 = vld [vmem:[%s8851_s3 + $0x5c0] sm:$0xff]  ;;  %v4875_v42 = vld [vmem:[%s8851_s3 + $0x5d0] sm:$0xff]  ;;  %v4876_v14 = vld [vmem:[%s8851_s3 + $0x5d8] sm:$0xff] }
  0xaf   : > { %6266 = vmatpush3.bf16.msra.mxu1 %v6263_v15  ;;  %5593 = vmatprep.mubr.msk.f32.mxu1 %vm525_vm0, %v7595_v7  ;;  %v4649_v15 = vld [vmem:[%s8851_s3 + $0x240] sm:$0xff]  ;;  %v4650_v7 = vld [vmem:[%s8851_s3 + $0x248] sm:$0xff] }
  0xb0   : > { %6268 = vmatprep.subr.bf16.mxu1 %v6267_v57  ;;  %5958 = vmatmul.mubr.msk.f32.gmra.mrb[4].mxu0 %vm525_vm0, %v8303_v35  ;;  %v1504_v6 = vsel %vm369_vm1, %v1502_v28, %v1503_v4  ;;  %v4874_v4 = vld [vmem:[%s8851_s3 + $0x5c8] sm:$0xff] }
  0xb1   : > { %6478 = vmatpush3.bf16.msra.mxu0 %v6475_v63  ;;  %5960 = vmatprep.mubr.msk.f32.mxu0 %vm525_vm0, %v8322_v31  ;;  %v4654_v63 = vld [vmem:[%s8851_s3 + $0x268] sm:$0xff] }
  0xb2   : > { %5594 = vmatmul.mubr.msk.f32.gmra.mrb[4].mxu1 %vm525_vm0, %v7611_v24  ;;  %v6275_v24 = vpack.c.bf16 %v4650_v7, %v4649_v15  ;;  %6480 = vmatprep.subr.bf16.mxu0 %v6479_v60  ;;  %v6499_v15 = vpack.c.bf16 %v4874_v4, %v4873_v41  ;;  %v4667_v7 = vld [vmem:[%s8851_s3 + $0x290] sm:$0xff]  ;;  %v4684_v41 = vld [vmem:[%s8851_s3 + $0x2d8] sm:$0xff] }
  0xb3   : > { %6270 = vmatpush3.bf16.msra.mxu1 %v6267_v57  ;;  %5596 = vmatprep.mubr.msk.f32.mxu1 %vm525_vm0, %v7924_v53  ;;  %v4652_v53 = vld [vmem:[%s8851_s3 + $0x258] sm:$0xff]  ;;  %v4653_v57 = vld [vmem:[%s8851_s3 + $0x260] sm:$0xff]  ;;  %v8907_v4 = vld [vmem:[#allocation15_spill] sm:$0xff] }
  0xb4   : > { %6272 = vmatprep.subr.bf16.mxu1 %v6271_v29  ;;  %5961 = vmatmul.mubr.msk.f32.gmra.mrb[6].mxu0 %vm525_vm0, %v8333_v38  ;;  %v6279_v61 = vpack.c.bf16 %v4652_v53, %v4651_v30  ;;  %v6283_v50 = vpack.c.bf16 %v4654_v63, %v4653_v57  ;;  %v4669_v30 = vld [vmem:[%s8851_s3 + $0x2a0] sm:$0xff]  ;;  %v4670_v53 = vld [vmem:[%s8851_s3 + $0x2a8] sm:$0xff]  ;;  %v4671_v57 = vld [vmem:[%s8851_s3 + $0x2b0] sm:$0xff] }
  0xb5   : > { %6482 = vmatpush3.bf16.msra.mxu0 %v6479_v60  ;;  %5979 = vmatprep.mubr.msk.f32.mxu0 %vm525_vm0, %v7957_v47  ;;  %v4862_v47 = vld [vmem:[%s8851_s3 + $0x5a8] sm:$0xff]  ;;  %v4672_v63 = vld [vmem:[%s8851_s3 + $0x2b8] sm:$0xff] }
  0xb6   : > { %5597 = vmatmul.mubr.msk.f32.gmra.mrb[6].mxu1 %vm525_vm0, %v1504_v6  ;;  %6484 = vmatprep.subr.bf16.mxu0 %v6483_v54  ;;  %v334_v6 = vld [vmem:[%s7200_s8 + $0x8] sm:$0x3] }
  0xb7   : > { %6274 = vmatpush3.bf16.msra.mxu1 %v6271_v29  ;;  %5615 = vmatprep.mubr.msk.f32.mxu1 %vm525_vm0, %v7637_v19  ;;  %v4861_v19 = vld [vmem:[%s8851_s3 + $0x5a0] sm:$0xff]  ;;  %v1631_v29 = vsel %vm833_vm6, %v1629_v3, %v1630_v16  ;;  %v1777_v20 = vmul.f32 0.2, %v334_v6  ;;  %vm1757_vm7 = vcmp.ge.f32.partialorder %v334_v6, 0.0  ;;  %v4890_v16 = vld [vmem:[%s8851_s3 + $0x608] sm:$0xff] }
  0xb8   : > { %6276 = vmatprep.subr.bf16.mxu1 %v6275_v24  ;;  %5980 = vmatmul.mubr.msk.f32.vlgmr.msra.gmra.mrb[0].mxu0 %vm525_vm0, %v7976_v27  ;;  %v4889_v3 = vld [vmem:[%s8851_s3 + $0x600] sm:$0xff] }
  0xb9   : > { %6486 = vmatpush3.bf16.msra.mxu0 %v6483_v54  ;;  %5982 = vmatprep.mubr.msk.f32.mxu0 %vm525_vm0, %v7985_v26  ;;  %v6503_v54 = vpack.c.bf16 %v4876_v14, %v4875_v42  ;;  %v4686_v42 = vld [vmem:[%s8851_s3 + $0x2e8] sm:$0xff]  ;;  %v8908_v14 = vld [vmem:[#allocation9_spill] sm:$0xff] }
  0xba   : > { %5616 = vmatmul.mubr.msk.f32.vlgmr.msra.gmra.mrb[0].mxu1 %vm525_vm0, %v7660_v44  ;;  %6488 = vmatprep.subr.bf16.mxu0 %v6487_v39  ;;  %v6491_v44 = vpack.c.bf16 %v4862_v47, %v4861_v19  ;;  %v8479_v19 = vsel %vm1757_vm7, %v334_v6, %v1777_v20  ;;  %v4879_v47 = vld [vmem:[%s8851_s3 + $0x5f0] sm:$0xff]  ;;  %v4894_v6 = vld [vmem:[%s8851_s3 + $0x628] sm:$0xff]  ;;  %v4688_v20 = vld [vmem:[%s8851_s3 + $0x2f8] sm:$0xff] }
  0xbb   : > { %6278 = vmatpush3.bf16.msra.mxu1 %v6275_v24  ;;  %5618 = vmatprep.mubr.msk.f32.mxu1 %vm525_vm0, %v7668_v34  ;;  %v4863_v34 = vld [vmem:[%s8851_s3 + $0x5b0] sm:$0xff] }
  0xbc   : > { %6280 = vmatprep.subr.bf16.mxu1 %v6279_v61  ;;  %5983 = vmatmul.mubr.msk.f32.gmra.mrb[2].mxu0 %vm525_vm0, %v7990_v56  ;;  %v6495_v28 = vpack.c.bf16 %v4864_v9, %v4863_v34  ;;  %v4681_v34 = vld [vmem:[%s8851_s3 + $0x2c0] sm:$0xff]  ;;  %v4682_v9 = vld [vmem:[%s8851_s3 + $0x2c8] sm:$0xff] }
  0xbd   : > { %6490 = vmatpush3.bf16.msra.mxu0 %v6487_v39  ;;  %5985 = vmatprep.mubr.msk.f32.mxu0 %vm525_vm0, %v8008_v59 }
  0xbe   : > { %5619 = vmatmul.mubr.msk.f32.gmra.mrb[2].mxu1 %vm525_vm0, %v7691_v17  ;;  %v6287_v17 = vpack.c.bf16 %v4656_v0, %v4655_v21  ;;  %6492 = vmatprep.subr.bf16.mxu0 %v6491_v44  ;;  %v6303_v21 = vpack.c.bf16 %v4672_v63, %v4671_v57  ;;  %v1971_v0 = vrot.slane %v8479_v19, 1 }
  0xbf   : > { %6282 = vmatpush3.bf16.msra.mxu1 %v6279_v61  ;;  %5621 = vmatprep.mubr.msk.f32.mxu1 %vm525_vm0, %v7698_v51  ;;  %v4666_v51 = vld [vmem:[%s8851_s3 + $0x288] sm:$0xff]  ;;  %v6299_v61 = vpack.c.bf16 %v4670_v53, %v4669_v30  ;;  %v4687_v53 = vld [vmem:[%s8851_s3 + $0x2f0] sm:$0xff] }
  0xc0   : > { %6284 = vmatprep.subr.bf16.mxu1 %v6283_v50  ;;  %5986 = vmatmul.mubr.msk.f32.gmra.mrb[4].mxu0 %vm525_vm0, %v8042_v11  ;;  %v6291_v60 = vpack.c.bf16 %v4666_v51, %v4665_v32  ;;  %v6515_v32 = vpack.c.bf16 %v4890_v16, %v4889_v3  ;;  %v4683_v51 = vld [vmem:[%s8851_s3 + $0x2d0] sm:$0xff]  ;;  %v6319_v63 = vpack.c.bf16 %v4688_v20, %v4687_v53  ;;  %v8914_v3 = vld [vmem:[#allocation26_spill] sm:$0xff]  ;;  %v8919_v20 = vld [vmem:[#allocation21_spill] sm:$0xff] }
  0xc1   : > { %6494 = vmatpush3.bf16.msra.mxu0 %v6491_v44  ;;  %5988 = vmatprep.mubr.msk.f32.mxu0 %vm525_vm0, %v8051_v55  ;;  %v4911_v53 = vld [vmem:[%s8851_s3 + $0x670] sm:$0xff] }
  0xc2   : > { %5622 = vmatmul.mubr.msk.f32.gmra.mrb[4].mxu1 %vm525_vm0, %v7721_v12  ;;  %v8429_v12 = vsel %vm1756_vm5, %v333_v8, %v1776_v5  ;;  %6496 = vmatprep.subr.bf16.mxu0 %v6495_v28  ;;  %v6307_v5 = vpack.c.bf16 %v4682_v9, %v4681_v34 }
  0xc3   : > { %6286 = vmatpush3.bf16.msra.mxu1 %v6283_v50  ;;  %5624 = vmatprep.mubr.msk.f32.mxu1 %vm525_vm0, %v8081_v49  ;;  %v4668_v49 = vld [vmem:[%s8851_s3 + $0x298] sm:$0xff]  ;;  %v1970_v44 = vrot.slane %v8429_v12, 1  ;;  %v2132_v57 = vrot.slane %v8429_v12, 2 }
  0xc4   : > { %6288 = vmatprep.subr.bf16.mxu1 %v6287_v17  ;;  %5989 = vmatmul.mubr.msk.f32.gmra.mrb[6].mxu0 %vm525_vm0, %v8003_v18  ;;  %v6295_v24 = vpack.c.bf16 %v4668_v49, %v4667_v7  ;;  %v4880_v50 = vld [vmem:[%s8851_s3 + $0x5f8] sm:$0xff]  ;;  %v4685_v49 = vld [vmem:[%s8851_s3 + $0x2e0] sm:$0xff] }
  0xc5   : > { %6498 = vmatpush3.bf16.msra.mxu0 %v6495_v28  ;;  %6007 = vmatprep.mubr.msk.f32.mxu0 %vm525_vm0, %v8109_v13  ;;  %v4877_v13 = vld [vmem:[%s8851_s3 + $0x5e0] sm:$0xff]  ;;  %v6511_v8 = vpack.c.bf16 %v4880_v50, %v4879_v47  ;;  %v2133_v47 = vrot.slane %v8479_v19, 2 }
  0xc6   : > { %5625 = vmatmul.mubr.msk.f32.gmra.mrb[6].mxu1 %vm525_vm0, %v1631_v29  ;;  %6500 = vmatprep.subr.bf16.mxu0 %v6499_v15  ;;  %v6507_v39 = vpack.c.bf16 %v4878_v25, %v4877_v13  ;;  %v8906_v28 = vld [vmem:[#allocation25_spill] sm:$0xff]  ;;  %v4891_v29 = vld [vmem:[%s8851_s3 + $0x610] sm:$0xff] }
  0xc7   : > { %6290 = vmatpush3.bf16.msra.mxu1 %v6287_v17  ;;  %5643 = vmatprep.mubr.msk.f32.mxu1 %vm525_vm0, %v8429_v12  ;;  %v1972_v17 = vsel %vm369_vm1, %v1970_v44, %v1971_v0  ;;  %v8910_v13 = vld [vmem:[#allocation11_spill] sm:$0xff]  ;;  %v4697_v44 = vld [vmem:[%s8851_s3 + $0x300] sm:$0xff]  ;;  %v4698_v12 = vld [vmem:[%s8851_s3 + $0x308] sm:$0xff]  ;;  %v2134_v34 = vsel %vm833_vm6, %v2132_v57, %v2133_v47 }
  0xc8   : > { %6292 = vmatprep.subr.bf16.mxu1 %v6291_v60  ;;  %6008 = vmatmul.mubr.msk.f32.vlgmr.msra.gmra.mrb[0].mxu0 %vm525_vm0, %v8130_v40  ;;  %v4895_v25 = vld [vmem:[%s8851_s3 + $0x630] sm:$0xff]  ;;  %v4905_v19 = vld [vmem:[%s8851_s3 + $0x640] sm:$0xff]  ;;  %v4906_v0 = vld [vmem:[%s8851_s3 + $0x648] sm:$0xff]  ;;  %v6323_v9 = vpack.c.bf16 %v4698_v12, %v4697_v44 }
  0xc9   : > { %6502 = vmatpush3.bf16.msra.mxu0 %v6499_v15  ;;  %6010 = vmatprep.mubr.msk.f32.mxu0 %vm525_vm0, %v8143_v43  ;;  %v6311_v15 = vpack.c.bf16 %v4684_v41, %v4683_v51  ;;  %v6531_v16 = vpack.c.bf16 %v4906_v0, %v4905_v19  ;;  %v4907_v51 = vld [vmem:[%s8851_s3 + $0x650] sm:$0xff]  ;;  %v4908_v41 = vld [vmem:[%s8851_s3 + $0x658] sm:$0xff]  ;;  %v8920_v57 = vld [vmem:[#allocation22_spill] sm:$0xff] }
  0xca   : > { %5644 = vmatmul.mubr.msk.f32.vlgmr.msra.gmra.mrb[0].mxu1 %vm525_vm0, %v7231_v2  ;;  %6504 = vmatprep.subr.bf16.mxu0 %v6503_v54  ;;  %v456_v47 = vld [vmem:[%s7870_s24 + $0x98] sm:$0x3]  ;;  %v4925_v19 = vld [vmem:[%s8851_s3 + $0x6a0] sm:$0xff]  ;;  %v4926_v0 = vld [vmem:[%s8851_s3 + $0x6a8] sm:$0xff] }
  0xcb   : > { %6294 = vmatpush3.bf16.msra.mxu1 %v6291_v60  ;;  %5646 = vmatprep.mubr.msk.f32.mxu1 %vm525_vm0, %v7244_v10  ;;  %v4892_v60 = vld [vmem:[%s8851_s3 + $0x618] sm:$0xff]  ;;  %vm3073_vm9 = vcmp.ge.f32.partialorder %v456_v47, 0.0 }
  0xcc   : > { %6296 = vmatprep.subr.bf16.mxu1 %v6295_v24  ;;  %6011 = vmatmul.mubr.msk.f32.gmra.mrb[2].mxu0 %vm525_vm0, %v8167_v36  ;;  %v6519_v7 = vpack.c.bf16 %v4892_v60, %v4891_v29  ;;  %v6535_v60 = vpack.c.bf16 %v4908_v41, %v4907_v51  ;;  %v4924_v44 = vld [vmem:[%s8851_s3 + $0x698] sm:$0xff]  ;;  %v6871_v41 = vld [vmem:[%s7200_s8 + $0x28] sm:$0x3] }
  0xcd   : > { %6506 = vmatpush3.bf16.msra.mxu0 %v6503_v54  ;;  %6013 = vmatprep.mubr.msk.f32.mxu0 %vm525_vm0, %v8180_v58  ;;  %v6315_v54 = vpack.c.bf16 %v4686_v42, %v4685_v49  ;;  %v8916_v49 = vld [vmem:[#allocation18_spill] sm:$0xff]  ;;  %v8917_v42 = vld [vmem:[#allocation19_spill] sm:$0xff]  ;;  %v8922_v12 = vld [vmem:[#allocation24_spill] sm:$0xff] }
  0xce   : > { %5647 = vmatmul.mubr.msk.f32.gmra.mrb[2].mxu1 %vm525_vm0, %v7272_v23  ;;  %6508 = vmatprep.subr.bf16.mxu0 %v6507_v39 }
  0xcf   : > { %6298 = vmatpush3.bf16.msra.mxu1 %v6295_v24  ;;  %5649 = vmatprep.mubr.msk.f32.mxu1 %vm525_vm0, %v7293_v33  ;;  %v8909_v24 = vld [vmem:[#allocation10_spill] sm:$0xff] }
  0xd0   : > { %6300 = vmatprep.subr.bf16.mxu1 %v6299_v61  ;;  %6014 = vmatmul.mubr.msk.f32.gmra.mrb[4].mxu0 %vm525_vm0, %v8198_v45 }
  0xd1   : > { %6510 = vmatpush3.bf16.msra.mxu0 %v6507_v39  ;;  %6016 = vmatprep.mubr.msk.f32.mxu0 %vm525_vm0, %v8211_v22  ;;  %v8911_v39 = vld [vmem:[#allocation12_spill] sm:$0xff] }
  0xd2   : > { %5650 = vmatmul.mubr.msk.f32.gmra.mrb[4].mxu1 %vm525_vm0, %v7325_v48  ;;  %6512 = vmatprep.subr.bf16.mxu0 %v6511_v8 }
  0xd3   : > { %6302 = vmatpush3.bf16.msra.mxu1 %v6299_v61  ;;  %5652 = vmatprep.mubr.msk.f32.mxu1 %vm525_vm0, %v7342_v1  ;;  %v4896_v61 = vld [vmem:[%s8851_s3 + $0x638] sm:$0xff] }
  0xd4   : > { %6304 = vmatprep.subr.bf16.mxu1 %v6303_v21  ;;  %6017 = vmatmul.mubr.msk.f32.gmra.mrb[6].mxu0 %vm525_vm0, %v8906_v28  ;;  %v6527_v50 = vpack.c.bf16 %v4896_v61, %v4895_v25  ;;  %v4921_v61 = vld [vmem:[%s8851_s3 + $0x680] sm:$0xff] }
  0xd5   : > { %6514 = vmatpush3.bf16.msra.mxu0 %v6511_v8  ;;  %6035 = vmatprep.mubr.msk.f32.mxu0 %vm525_vm0, %v8242_v52  ;;  %v4893_v52 = vld [vmem:[%s8851_s3 + $0x620] sm:$0xff]  ;;  %v8913_v8 = vld [vmem:[#allocation14_spill] sm:$0xff] }
  0xd6   : > { %5653 = vmatmul.mubr.msk.f32.gmra.mrb[6].mxu1 %vm525_vm0, %v8907_v4  ;;  %6516 = vmatprep.subr.bf16.mxu0 %v6515_v32  ;;  %v6523_v30 = vpack.c.bf16 %v4894_v6, %v4893_v52 }
  0xd7   : > { %6306 = vmatpush3.bf16.msra.mxu1 %v6303_v21  ;;  %5671 = vmatprep.mubr.msk.f32.mxu1 %vm525_vm0, %v1972_v17  ;;  %v8912_v21 = vld [vmem:[#allocation13_spill] sm:$0xff]  ;;  %v4699_v17 = vld [vmem:[%s8851_s3 + $0x310] sm:$0xff] }
  0xd8   : > { %6308 = vmatprep.subr.bf16.mxu1 %v6307_v5  ;;  %6036 = vmatmul.mubr.msk.f32.vlgmr.msra.gmra.mrb[0].mxu0 %vm525_vm0, %v8256_v46 }
  0xd9   : > { %6518 = vmatpush3.bf16.msra.mxu0 %v6515_v32  ;;  %6038 = vmatprep.mubr.msk.f32.mxu0 %vm525_vm0, %v8271_v62  ;;  %v8915_v32 = vld [vmem:[#allocation17_spill] sm:$0xff] }
  0xda   : > { %5672 = vmatmul.mubr.msk.f32.vlgmr.msra.gmra.mrb[0].mxu1 %vm525_vm0, %v8908_v14  ;;  %6520 = vmatprep.subr.bf16.mxu0 %v6519_v7  ;;  %v455_v14 = vld [vmem:[%s7870_s24 + $0x90] sm:$0xff] }
  0xdb   : > { %6310 = vmatpush3.bf16.msra.mxu1 %v6307_v5  ;;  %5674 = vmatprep.mubr.msk.f32.mxu1 %vm525_vm0, %v8909_v24  ;;  %v4700_v5 = vld [vmem:[%s8851_s3 + $0x318] sm:$0xff]  ;;  %v4703_v24 = vld [vmem:[%s8851_s3 + $0x330] sm:$0xff]  ;;  %vm3072_vm8 = vcmp.ge.f32.partialorder %v455_v14, 0.0 }
  0xdc   : > { %6312 = vmatprep.subr.bf16.mxu1 %v6311_v15  ;;  %6039 = vmatmul.mubr.msk.f32.gmra.mrb[2].mxu0 %vm525_vm0, %v8290_v37  ;;  %v6327_v29 = vpack.c.bf16 %v4700_v5, %v4699_v17  ;;  %v6869_v17 = vld [vmem:[%s7200_s8 + $0x80] sm:$0xff] }
  0xdd   : > { %6522 = vmatpush3.bf16.msra.mxu0 %v6519_v7  ;;  %6041 = vmatprep.mubr.msk.f32.mxu0 %vm525_vm0, %v8303_v35  ;;  %v4702_v7 = vld [vmem:[%s8851_s3 + $0x328] sm:$0xff]  ;;  %v391_v5 = vrot.slane %v6869_v17, 1 }
  0xde   : > { %5675 = vmatmul.mubr.msk.f32.gmra.mrb[2].mxu1 %vm525_vm0, %v8910_v13  ;;  %6524 = vmatprep.subr.bf16.mxu0 %v6523_v30 }
  0xdf   : > { %6314 = vmatpush3.bf16.msra.mxu1 %v6311_v15  ;;  %5677 = vmatprep.mubr.msk.f32.mxu1 %vm525_vm0, %v8911_v39  ;;  %v4701_v15 = vld [vmem:[%s8851_s3 + $0x320] sm:$0xff]  ;;  %v4922_v39 = vld [vmem:[%s8851_s3 + $0x688] sm:$0xff] }
  0xe0   : > { %6316 = vmatprep.subr.bf16.mxu1 %v6315_v54  ;;  %6042 = vmatmul.mubr.msk.f32.gmra.mrb[4].mxu0 %vm525_vm0, %v8322_v31  ;;  %v6331_v52 = vpack.c.bf16 %v4702_v7, %v4701_v15  ;;  %v6872_v15 = vld [vmem:[%s7200_s8 + $0x70] sm:$0xff] }
  0xe1   : > { %6526 = vmatpush3.bf16.msra.mxu0 %v6523_v30  ;;  %6044 = vmatprep.mubr.msk.f32.mxu0 %vm525_vm0, %v8333_v38  ;;  %v8918_v30 = vld [vmem:[#allocation20_spill] sm:$0xff]  ;;  %v388_v7 = vrot.slane %v6872_v15, 1 }
  0xe2   : > { %5678 = vmatmul.mubr.msk.f32.gmra.mrb[4].mxu1 %vm525_vm0, %v8912_v21  ;;  %6528 = vmatprep.subr.bf16.mxu0 %v6527_v50 }
  0xe3   : > { %6318 = vmatpush3.bf16.msra.mxu1 %v6315_v54  ;;  %5680 = vmatprep.mubr.msk.f32.mxu1 %vm525_vm0, %v8913_v8  ;;  %v4704_v54 = vld [vmem:[%s8851_s3 + $0x338] sm:$0xff] }
  0xe4   : > { %6320 = vmatprep.subr.bf16.mxu1 %v6319_v63  ;;  %6045 = vmatmul.mubr.msk.f32.gmra.mrb[6].mxu0 %vm525_vm0, %v8914_v3  ;;  %v6335_v13 = vpack.c.bf16 %v4704_v54, %v4703_v24 }
  0xe5   : > { %6530 = vmatpush3.bf16.msra.mxu0 %v6527_v50  ;;  %6063 = vmatprep.mubr.msk.f32.mxu0 %vm525_vm0, %v7976_v27  ;;  %v4909_v27 = vld [vmem:[%s8851_s3 + $0x660] sm:$0xff]  ;;  %v4923_v50 = vld [vmem:[%s8851_s3 + $0x690] sm:$0xff] }
  0xe6   : > { %5681 = vmatmul.mubr.msk.f32.gmra.mrb[6].mxu1 %vm525_vm0, %v8915_v32  ;;  %6532 = vmatprep.subr.bf16.mxu0 %v6531_v16  ;;  %v6551_v21 = vpack.c.bf16 %v4924_v44, %v4923_v50  ;;  %v6870_v32 = vld [vmem:[%s7200_s8 + $0x88] sm:$0x3] }
  0xe7   : > { %6322 = vmatpush3.bf16.msra.mxu1 %v6319_v63  ;;  %5699 = vmatprep.mubr.msk.f32.mxu1 %vm525_vm0, %v2134_v34  ;;  %v8921_v63 = vld [vmem:[#allocation23_spill] sm:$0xff]  ;;  %v392_v51 = vrot.slane %v6870_v32, 1 }
  0xe8   : > { %6324 = vmatprep.subr.bf16.mxu1 %v6323_v9  ;;  %6064 = vmatmul.mubr.msk.f32.vlgmr.msra.gmra.mrb[0].mxu0 %vm525_vm0, %v7985_v26  ;;  %v4910_v26 = vld [vmem:[%s8851_s3 + $0x668] sm:$0xff] }
  0xe9   : > { %6534 = vmatpush3.bf16.msra.mxu0 %v6531_v16  ;;  %6066 = vmatprep.mubr.msk.f32.mxu0 %vm525_vm0, %v7990_v56  ;;  %v6539_v6 = vpack.c.bf16 %v4910_v26, %v4909_v27  ;;  %v3092_v56 = vmul.f32 0.2, %v455_v14  ;;  %v4512_v26 = vld [vmem:[%s8852_s4] ss:$0 sm:$0xff] }
  0xea   : > { %5700 = vmatmul.mubr.msk.f32.vlgmr.msra.gmra.mrb[0].mxu1 %vm525_vm0, %v8916_v49  ;;  %6536 = vmatprep.subr.bf16.mxu0 %v6535_v60  ;;  %v6873_v49 = vld [vmem:[%s7200_s8 + $0x78] sm:$0x3] }
  0xeb   : > { %6326 = vmatpush3.bf16.msra.mxu1 %v6323_v9  ;;  %5702 = vmatprep.mubr.msk.f32.mxu1 %vm525_vm0, %v8917_v42  ;;  %v389_v27 = vrot.slane %v6873_v49, 1  ;;  %v6874_v42 = vld [vmem:[%s7200_s8 + $0x10] sm:$0xff] }
  0xec   : > { %6328 = vmatprep.subr.bf16.mxu1 %v6327_v29  ;;  %6067 = vmatmul.mubr.msk.f32.gmra.mrb[2].mxu0 %vm525_vm0, %v8008_v59  ;;  %v4912_v59 = vld [vmem:[%s8851_s3 + $0x678] sm:$0xff] }
  0xed   : > { %6538 = vmatpush3.bf16.msra.mxu0 %v6535_v60  ;;  %6069 = vmatprep.mubr.msk.f32.mxu0 %vm525_vm0, %v8042_v11  ;;  %v6543_v25 = vpack.c.bf16 %v4912_v59, %v4911_v53  ;;  %v8668_v11 = vsel %vm3072_vm8, %v455_v14, %v3092_v56  ;;  %v370_v14 = vrot.slane %v6874_v42, 1  ;;  %v393_v53 = vsel %vm369_vm1, %v391_v5, %v392_v51 }
  0xee   : > { %5703 = vmatmul.mubr.msk.f32.gmra.mrb[2].mxu1 %vm525_vm0, %v8918_v30  ;;  %6540 = vmatprep.subr.bf16.mxu0 %v6539_v6 }
  0xef   : > { %6330 = vmatpush3.bf16.msra.mxu1 %v6327_v29  ;;  %5705 = vmatprep.mubr.msk.f32.mxu1 %vm525_vm0, %v8919_v20  ;;  %v374_v29 = vrot.slane %v6871_v41, 1  ;;  %v6876_v20 = vld [vmem:[%s7200_s8 + $0x40] sm:$0xff] }
  0xf0   : > { %6332 = vmatprep.subr.bf16.mxu1 %v6331_v52  ;;  %6070 = vmatmul.mubr.msk.f32.gmra.mrb[4].mxu0 %vm525_vm0, %v8051_v55  ;;  %v6547_v55 = vpack.c.bf16 %v4922_v39, %v4921_v61 }
  0xf1   : > { %6542 = vmatpush3.bf16.msra.mxu0 %v6539_v6  ;;  %6072 = vmatprep.mubr.msk.f32.mxu0 %vm525_vm0, %v8003_v18  ;;  %v3093_v18 = vmul.f32 0.2, %v456_v47 }
  0xf2   : > { %5706 = vmatmul.mubr.msk.f32.gmra.mrb[4].mxu1 %vm525_vm0, %v8920_v57  ;;  %6544 = vmatprep.subr.bf16.mxu0 %v6543_v25  ;;  %v390_v57 = vsel %vm369_vm1, %v388_v7, %v389_v27 }
  0xf3   : > { %6334 = vmatpush3.bf16.msra.mxu1 %v6331_v52  ;;  %5708 = vmatprep.mubr.msk.f32.mxu1 %vm525_vm0, %v8921_v63  ;;  %v6875_v52 = vld [vmem:[%s7200_s8 + $0x18] sm:$0x3]  ;;  %v6878_v63 = vld [vmem:[%s7200_s8 + $0x30] sm:$0xff] }
  0xf4   : > { %6336 = vmatprep.subr.bf16.mxu1 %v6335_v13  ;;  %6073 = vmatmul.mubr.msk.f32.gmra.mrb[6].mxu0 %vm525_vm0, %v8668_v11  ;;  %v371_v6 = vrot.slane %v6875_v52, 1 }
  0xf5   : > { %6546 = vmatpush3.bf16.msra.mxu0 %v6543_v25  ;;  %6091 = vmatprep.mubr.msk.f32.mxu0 %vm525_vm0, %v8130_v40  ;;  %v6555_v40 = vpack.c.bf16 %v4926_v0, %v4925_v19  ;;  %v6877_v25 = vld [vmem:[%s7200_s8 + $0x48] sm:$0x3]  ;;  %v416_v19 = vadd.f32 %v4512_v26, %v393_v53 }
  0xf6   : > { %5709 = vmatmul.mubr.msk.f32.gmra.mrb[6].mxu1 %vm525_vm0, %v8922_v12  ;;  %6548 = vmatprep.subr.bf16.mxu0 %v6547_v55  ;;  %v380_v61 = vrot.slane %v6877_v25, 1 }
  0xf7   : > { %6338 = vmatpush3.bf16.msra.mxu1 %v6335_v13  ;;  %5727 = vmatprep.mubr.msk.f32.mxu1 %vm525_vm0, %v7231_v2  ;;  %v3113_v2 = vsel %vm3073_vm9, %v456_v47, %v3093_v18  ;;  %v379_v13 = vrot.slane %v6876_v20, 1  ;;  %v6879_v47 = vld [vmem:[%s7200_s8 + $0x38] sm:$0x3] }
  0xf8   : > { %6092 = vmatmul.mubr.msk.f32.vlgmr.msra.gmra.mrb[0].mxu0 %vm525_vm0, %v8143_v43  ;;  %6563 = vmatprep.subr.bf16.mxu1 %v6547_v55  ;;  %v4927_v43 = vld [vmem:[%s8851_s3 + $0x6b0] sm:$0xff]  ;;  %v377_v50 = vrot.slane %v6879_v47, 1 }
  0xf9   : > { %6550 = vmatpush3.bf16.msra.mxu0 %v6547_v55  ;;  %6094 = vmatprep.mubr.msk.f32.mxu0 %vm525_vm0, %v8167_v36  ;;  %v4099_v36 = vrot.slane %v3113_v2, 1 }
  0xfa   : > { %5728 = vmatmul.mubr.msk.f32.vlgmr.msra.gmra.mrb[0].mxu1 %vm525_vm0, %v7244_v10  ;;  %6552 = vmatprep.subr.bf16.mxu0 %v6551_v21  ;;  %v4928_v10 = vld [vmem:[%s8851_s3 + $0x6b8] sm:$0xff] }
  0xfb   : > { %6567 = vmatpush3.bf16.msra.mxu1 %v6547_v55  ;;  %5730 = vmatprep.mubr.msk.f32.mxu1 %vm525_vm0, %v7272_v23  ;;  %v4098_v23 = vrot.slane %v8668_v11, 1  ;;  %v376_v55 = vrot.slane %v6878_v63, 1 }
  0xfc   : > { %6095 = vmatmul.mubr.msk.f32.gmra.mrb[2].mxu0 %vm525_vm0, %v8180_v58  ;;  %6564 = vmatprep.subr.bf16.mxu1 %v6551_v21  ;;  %v6559_v58 = vpack.c.bf16 %v4928_v10, %v4927_v43  ;;  %v381_v10 = vsel %vm369_vm1, %v379_v13, %v380_v61 }
  0xfd   : > { %6554 = vmatpush3.bf16.msra.mxu0 %v6551_v21  ;;  %6097 = vmatprep.mubr.msk.f32.mxu0 %vm525_vm0, %v8198_v45  ;;  %v4226_v45 = vrot.slane %v3113_v2, 2 }
  0xfe   : > { %5731 = vmatmul.mubr.msk.f32.gmra.mrb[2].mxu1 %vm525_vm0, %v7293_v33  ;;  %6556 = vmatprep.subr.bf16.mxu0 %v6555_v40  ;;  %v4100_v33 = vsel %vm369_vm1, %v4098_v23, %v4099_v36 }
  0xff   : > { %6568 = vmatpush3.bf16.msra.mxu1 %v6551_v21  ;;  %5733 = vmatprep.mubr.msk.f32.mxu1 %vm525_vm0, %v7325_v48  ;;  %v8923_v48 = vld [vmem:[#allocation16_spill] sm:$0xff] }
 0x100   : > { %6098 = vmatmul.mubr.msk.f32.gmra.mrb[4].mxu0 %vm525_vm0, %v8211_v22  ;;  %6565 = vmatprep.subr.bf16.mxu1 %v6555_v40 }
 0x101   : > { %6558 = vmatpush3.bf16.msra.mxu0 %v6555_v40  ;;  %6100 = vmatprep.mubr.msk.f32.mxu0 %vm525_vm0, %v8906_v28  ;;  %v6866_v28 = vld [vmem:[%s7200_s8 + $0x50] sm:$0xff] }
 0x102   : > { %5734 = vmatmul.mubr.msk.f32.gmra.mrb[4].mxu1 %vm525_vm0, %v7342_v1  ;;  %6560 = vmatprep.subr.bf16.mxu0 %v6559_v58  ;;  %v4225_v1 = vrot.slane %v8668_v11, 2  ;;  %v372_v11 = vsel %vm369_vm1, %v370_v14, %v371_v6 }
 0x103   : > { %6569 = vmatpush3.bf16.msra.mxu1 %v6555_v40  ;;  %5736 = vmatprep.mubr.msk.f32.mxu1 %vm525_vm0, %v8907_v4  ;;  %v6867_v4 = vld [vmem:[%s7200_s8 + $0x58] sm:$0x3]  ;;  %v415_v40 = vadd.f32 %v4512_v26, %v390_v57  ;;  %v409_v43 = vadd.f32 %v4512_v26, %v372_v11 }
 0x104   : > { %6101 = vmatmul.mubr.msk.f32.gmra.mrb[6].mxu0 %vm525_vm0, %v4100_v33  ;;  %6566 = vmatprep.subr.bf16.mxu1 %v6559_v58  ;;  %v4227_v22 = vsel %vm833_vm6, %v4225_v1, %v4226_v45  ;;  %v383_v8 = vrot.slane %v6867_v4, 1 }
 0x105   : > { %6562 = vmatpush3.bf16.msra.mxu0 %v6559_v58  ;;  %6119 = vmatprep.mubr.msk.f32.mxu0 %vm525_vm0, %v8256_v46  ;;  %v6864_v46 = vld [vmem:[%s7200_s8 + $0x60] sm:$0xff] }
 0x106   : > { %5737 = vmatmul.mubr.msk.f32.gmra.mrb[6].mxu1 %vm525_vm0, %v8923_v48 }
 0x107   : > { %6570 = vmatpush3.bf16.msra.mxu1 %v6559_v58  ;;  %6125 = vmatprep.mubr.msk.f32.mxu1 %vm525_vm0, %v8322_v31  ;;  %v6865_v31 = vld [vmem:[%s7200_s8 + $0x68] sm:$0x3]  ;;  %v378_v58 = vsel %vm369_vm1, %v376_v55, %v377_v50 }
 0x108   : > { %6120 = vmatmul.mubr.msk.f32.vlgmr.msra.gmra.mrb[0].mxu0 %vm525_vm0, %v8271_v62  ;;  %v385_v62 = vrot.slane %v6864_v46, 1 }
 0x109   : > { %6122 = vmatprep.mubr.msk.f32.mxu0 %vm525_vm0, %v8290_v37  ;;  %v382_v37 = vrot.slane %v6866_v28, 1  ;;  %v411_v28 = vadd.f32 %v4512_v26, %v378_v58 }
 0x10a   : > { %6126 = vmatmul.mubr.msk.f32.vlgmr.msra.gmra.mrb[8].mxu1 %vm525_vm0, %v8333_v38  ;;  %v386_v38 = vrot.slane %v6865_v31, 1 }
 0x10b   : > { %6128 = vmatprep.mubr.msk.f32.mxu1 %vm525_vm0, %v8914_v3  ;;  %v6868_v3 = vld [vmem:[%s7200_s8 + $0x20] sm:$0xff]  ;;  %v384_v60 = vsel %vm369_vm1, %v382_v37, %v383_v8  ;;  %s4938_s8 = sshll.u32 %s6958_s21, 3  ;;  %s301_s21 = scalar_lea.vmem [#allocation2], %s4508_s29 }
 0x10c   : > { %6123 = vmatmul.mubr.msk.f32.gmra.mrb[2].mxu0 %vm525_vm0, %v8303_v35  ;;  %v373_v16 = vrot.slane %v6868_v3, 1  ;;  %v387_v35 = vsel %vm369_vm1, %v385_v62, %v386_v38  ;;  %v413_v56 = vadd.f32 %v4512_v26, %v384_v60  ;;  %v412_v62 = vadd.f32 %v4512_v26, %v381_v10  ;;  %s4373_s9 = sadd.s32 %s4939_s28, %s4938_s8  ;;  %s4376_s27 = sshll.u32 %s301_s21, 4  ;;  %s8788_s27 = int_to_ptr.vmem [resolvable:$true] %s4376_s27 }
 0x10d   : > { %v414_v30 = vadd.f32 %v4512_v26, %v387_v35  ;;  %s4940_s22 = sshll.u32 %s4373_s9, 7  ;;  %s6880_s10 = scalar_lea.vmem %s8788_s27, 1024 }
 0x10e   : > { %6129 = vmatmul.mubr.msk.f32.gmra.mrb[10].mxu1 %vm525_vm0, %v4227_v22  ;;  %v375_v59 = vsel %vm369_vm1, %v373_v16, %v374_v29  ;;  %s8786_s14 = scalar_lea.hbm %s8853_s5, %s4940_s22  ;;  %p6881_p2 = scmp.ne.s32.totalorder %s8788_s27, %s6880_s10 }
 0x10f   : > { %v410_v0 = vadd.f32 %v4512_v26, %v375_v59  ;;  %p6887_p6 = scmp.lt.s32.totalorder %s8788_s27, %s6885_s16  ;;  %p6888_p7 = scmp.lt.s32.totalorder %s6886_s17, %s6880_s10 }
 0x110   : > { %p6882_p4 = pnand %p6881_p2, %p7060_p3 }
 0x111   : > { %p6889_p9 = por %p6888_p7, %p6887_p6 }
 0x112   : > { %p6883_p5 = pneg %p6882_p4 }
 0x114   : > { %p6890_p10 = pnand %p6889_p9, %p6883_p5 }
 0x1cd   : > { %v5729_v34 = vpop.f32.mrb[0].mxu1 }
 0x1ce   : > { %v2372_v9 = vpop.f32.mrb[1].mxu1  ;;  %v6571_v46 = vadd.f32 %v5729_v34, %v410_v0 }
 0x1cf   : > { %v6573_v38 = vadd.f32 %v2372_v9, %v409_v43 }
 0x1d1   : > { %v5732_v24 = vpop.f32.mrb[2].mxu1 }
 0x1d2   : > { %v2382_v54 = vpop.f32.mrb[3].mxu1  ;;  %v6575_v51 = vadd.f32 %v5732_v24, %v412_v62 }
 0x1d3   : > { %v6099_v39 = vpop.f32.mrb[4].mxu0  ;;  %v6577_v34 = vadd.f32 %v2382_v54, %v411_v28 }
 0x1d4   : > { %v4198_v12 = vpop.f32.mrb[5].mxu0 }
 0x1d5   : > { %v5735_v44 = vpop.f32.mrb[4].mxu1 }
 0x1d6   : > { %v6579_v18 = vadd.f32 %v5735_v44, %v414_v30  ;;  %v2392_v21 = vpop.f32.mrb[5].mxu1 }
 0x1d7   : > { %v6582_v2 = vadd.f32 %v2392_v21, %v413_v56  ;;  %v6102_v36 = vpop.f32.mrb[6].mxu0 }
 0x1d8   : > { %v6580_v23 = vadd.f32 %v6579_v18, %v6099_v39  ;;  %v4208_v1 = vpop.f32.mrb[7].mxu0 }
 0x1d9   : > { %v6583_v33 = vadd.f32 %v6582_v2, %v4198_v12  ;;  %v5738_v48 = vpop.f32.mrb[6].mxu1 }
 0x1da   : > { %v6585_v45 = vadd.f32 %v5738_v48, %v416_v19  ;;  %v2402_v22 = vpop.f32.mrb[7].mxu1 }
 0x1db   : > { %v6588_v31 = vadd.f32 %v2402_v22, %v415_v40  ;;  %v6121_v4 = vpop.f32.mrb[0].mxu0 }
 0x1dc   : > { %v6586_v37 = vadd.f32 %v6585_v45, %v6102_v36  ;;  %v6572_v3 = vadd.f32 %v6571_v46, %v6121_v4  ;;  %v4305_v35 = vpop.f32.mrb[1].mxu0 }
 0x1dd   : > { %v6589_v8 = vadd.f32 %v6588_v31, %v4208_v1  ;;  %v6127_v16 = vpop.f32.mrb[8].mxu1  ;;  %v6574_v5 = vadd.f32 %v6573_v38, %v4305_v35 }
 0x1de   : > { %v6581_v17 = vadd.f32 %v6580_v23, %v6127_v16  ;;  %v4325_v32 = vpop.f32.mrb[9].mxu1  ;;  %4353 = vst.msk [vmem:[%s301_s21 + $0x8] sm:$0xff] %vm525_vm0, %v6572_v3 }
 0x1df   : > { %v6584_v41 = vadd.f32 %v6583_v33, %v4325_v32  ;;  %4352 = vst.msk [vmem:[%s301_s21] sm:$0xff] %vm525_vm0, %v6574_v5  ;;  %v6124_v9 = vpop.f32.mrb[2].mxu0 }
 0x1e0   : > { %4357 = vst.msk [vmem:[%s301_s21 + $0x28] sm:$0xff] %vm525_vm0, %v6581_v17  ;;  %v6576_v29 = vadd.f32 %v6575_v51, %v6124_v9  ;;  %v4315_v15 = vpop.f32.mrb[3].mxu0 }
 0x1e1   : > { %4356 = vst.msk [vmem:[%s301_s21 + $0x20] sm:$0xff] %vm525_vm0, %v6584_v41  ;;  %v6130_v60 = vpop.f32.mrb[10].mxu1  ;;  %v6578_v49 = vadd.f32 %v6577_v34, %v4315_v15 }
 0x1e2   : > { %v6587_v7 = vadd.f32 %v6586_v37, %v6130_v60  ;;  %v4335_v27 = vpop.f32.mrb[11].mxu1  ;;  %4355 = vst.msk [vmem:[%s301_s21 + $0x18] sm:$0xff] %vm525_vm0, %v6576_v29 }
 0x1e3   : > { %v6590_v26 = vadd.f32 %v6589_v8, %v4335_v27  ;;  %4354 = vst.msk [vmem:[%s301_s21 + $0x10] sm:$0xff] %vm525_vm0, %v6578_v49 }
 0x1e4   : > { %4359 = vst.msk [vmem:[%s301_s21 + $0x38] sm:$0xff] %vm525_vm0, %v6587_v7 }
 0x1e5   : > { %4358 = vst.msk [vmem:[%s301_s21 + $0x30] sm:$0xff] %vm525_vm0, %v6590_v26 }
 0x1e6   : > { %6893 = shalt.err (!%p6890_p10)
}
 0x1e7   : > { %s6894_s13 = scalar_lea.hbm %s8786_s14, 1024  ;;  %s6898_s29 = scalar_lea.hbm %s8853_s5, 8192 }
 0x1e8   : > { %p6895_p11 = scmp.ne.s32.totalorder %s8786_s14, %s6894_s13  ;;  %p6899_p0 = scmp.lt.u32.totalorder %s8786_s14, %s8853_s5 }
 0x1e9   : > { %p6900_p1 = scmp.lt.u32.totalorder %s6898_s29, %s6894_s13  ;;  %p6902_p4 = scmp.lt.u32.totalorder %s6894_s13, %s8786_s14 }
 0x1ea   : > { %p6896_p12 = pnand %p6895_p11, %p7060_p3 }
 0x1eb   : > { %p6901_p2 = por %p6900_p1, %p6899_p0 }
 0x1ec   : > { %p6897_p13 = pneg %p6896_p12 }
 0x1ed   : > { %p6903_p5 = por %p6902_p4, %p6901_p2 }
 0x1ef   : > { %p6904_p6 = pnand %p6903_p5, %p6897_p13 }
 0x1f1   : > { %6907 = shalt.err (!%p6904_p6)
}
 0x1f2   : > { %s6977_s9 = smov 128   ;;  %s6978_s21 = smov 8  }
 0x1f3   : > { %6791 = dma.vmem_to_hbm [thread:$0]  (%p7060_p3), %s8788_s27, 1024, %s8786_s14, %s8796_s12, %s6977_s9, %s6977_s9, %s6978_s21  }
 0x1f4 PF: > { %p6797_p7 = scmp.ge.s32.totalorder %s6974_s25, 2  ;;  %s4391_s22 = sand.u32 1, %s6946_s18  }
 0x1f5   : > { %s4392_s24 = scalar_lea.sflag [#allocation3], %s4391_s22 }
 0x1f6   : > { %p6794_p9 = pnand %p6797_p7, %p7069_p8 }
 0x1f8   : > { %6941 = dma.done.wait (!%p6794_p9), %s4392_s24, 1024  }
 0x1f9   : > { %6943 = vsyncadd (!%p6794_p9), %s4392_s24, 4294966272  ;;  %s18_s25 = sadd.s32 1, %s6974_s25   ;;  %s8924_s21 = sld [smem:[#allocation5_spill]] }
 0x1fa   : > { %p15_p10 = scmp.ge.s32.totalorder %s18_s25, 10   ;;  %s8925_s22 = sld [smem:[#allocation6_spill]] }
 0x1fb   : > { %s8926_s23 = sld [smem:[#allocation7_spill]]  ;;  %s8927_s24 = sld [smem:[#allocation8_spill]] }
 0x1fc   : > { %s8928_s18 = smov %s6950_s19  ;;  %s8929_s19 = smov %s6954_s20 }
 0x1fd   : > { %s8930_s20 = smov %s7078_s11  ;;  %17 = sbr.rel (!%p15_p10) target bundleno = 5 (0x5), region = 107 }
 0x204   :  { %4397 = vsyncpa [#allocation3], 1 }
 0x205   :  { %4399 = vsyncpa [#allocation3 + $0x1], 1 }

</bundles_post_ra>
